<compile_context>
chip_gen: v6e
topology: v6e:2x2x1
jax: 0.10.0
libtpu: 0.0.40
codegen_flags: <defaults>
</compile_context>

<pallas_src>
import math
from functools import partial

import jax
import jax.numpy as jnp
from jax.experimental import pallas as pl
from jax.experimental.pallas import tpu as pltpu

LN_EPS = 1e-5


def _layernorm_f32(x, gamma, beta):
    mu = jnp.mean(x, axis=-1, keepdims=True)
    var = jnp.mean((x - mu) ** 2, axis=-1, keepdims=True)
    return (x - mu) * jax.lax.rsqrt(var + LN_EPS) * gamma + beta


# ---------------------------------------------------------------------------
# Per-generation VMEM budgeting
# ---------------------------------------------------------------------------
def _vmem_budget_bytes():
    """~75% of physical VMEM: ~48 MiB on v7x (64 MiB phys), ~96 MiB on v5e/v6e (128 MiB)."""
    try:
        phys = int(pltpu.get_tpu_info().vmem_capacity_bytes)
    except Exception:
        phys = 64 * 1024 * 1024          # conservative fallback (safe on every generation)
    return (phys * 3) // 4


def _bias_row_tile(I, J, C, H, budget):
    """Kernel-1 I-rows per step: biggest divisor of I (<=32) whose working set fits."""
    best = 1
    for t in range(1, min(I, 32) + 1):
        if I % t:
            continue
        need = (2 * t * J * C * 2        # x block, bf16, double-buffered
                + t * J * C * 4          # LayerNorm intermediate, f32
                + 2 * H * t * J * 2)     # triangle-bias output block, bf16, double-buffered
        if need <= budget:
            best = t
    return best


def _attn_row_tile(B, I, J, C, H, D, x_bytes, out_bytes, budget):
    """Kernel-2 I-rows per step, from an explicit VMEM working-set estimate."""
    HD = H * D

    def need(ti):
        n = ti * J
        b = 2 * ti * J * C * x_bytes         # x block (double-buffered)
        b += 2 * ti * J * C * out_bytes      # output block (double-buffered)
        b += 2 * H * J * J * 2               # triangle bias, bf16 (double-buffered)
        b += 2 * ti * J * 2                  # raw mask, bf16
        b += 2 * (C * 4 * HD + HD * C) * 2   # fused projection + output weights, bf16
        b += n * C * 4                       # LayerNorm, f32
        b += n * 4 * HD * 4                  # merged q|k|v|g projection, f32
        b += 4 * n * HD * 2                  # q, k, v, gate, bf16
        b += 2 * ti * J * J * 4              # logits + softmax p, f32 (dominant at big J)
        b += n * HD * 2                      # per-head output scratch, bf16
        b += n * C * 4                       # pre-cast output, f32
        return b

    cands = [t for t in range(1, I + 1) if I % t == 0 and need(t) <= budget]
    if not cands:
        return 1
    best = max(cands)
    # Prefer an even folded grid so the v7x 2-TensorCore megacore split stays balanced.
    if (B * (I // best)) % 2 != 0:
        even = [t for t in cands if (B * (I // t)) % 2 == 0]
        if even:
            best = max(even)
    return best


# ---------------------------------------------------------------------------
# Kernel 1: LayerNorm + triangle-bias linear (C -> H) for TI1 rows of I per step,
#           written pre-transposed as [B, H, I(query), J(key)] (contiguous per head).
# ---------------------------------------------------------------------------
def _tri_bias_kernel(x_ref, gamma_ref, beta_ref, wtri_t_ref, tri_ref):
    ti1 = x_ref.shape[1]
    x = x_ref[0].astype(jnp.float32)                        # [ti1, J, C]
    ln = _layernorm_f32(x, gamma_ref[...], beta_ref[...])   # [ti1, J, C]
    wtri_t = wtri_t_ref[...]                                 # [H, C]
    for t in range(ti1):                                     # static, bounded by the tile cap
        # [H, J] = wtri^T @ ln_t^T, expressed as an A @ B^T contraction (no transpose)
        tri_t = jax.lax.dot_general(
            wtri_t, ln[t], (((1,), (1,)), ((), ())),
            preferred_element_type=jnp.float32)
        tri_ref[0, :, t, :] = tri_t.astype(tri_ref.dtype)


# ---------------------------------------------------------------------------
# Kernel 2: gated multi-head attention over the J axis for TI rows per step.
#           LayerNorm recomputed in-kernel; mask bias computed in-kernel.
# ---------------------------------------------------------------------------
def _attn_kernel(x_ref, tri_ref, mask_ref, gamma_ref, beta_ref,
                 wqkvg_ref, bg_ref, wo_ref, bo_ref, out_ref, og_ref,
                 *, num_heads, head_dim, inf):
    _, ti, sj, c = x_ref.shape
    hd = num_heads * head_dim
    n = ti * sj

    # Fused LayerNorm (f32 math) instead of an HBM round-trip of a full ln tensor.
    x = x_ref[0].reshape(n, c).astype(jnp.float32)
    ln = _layernorm_f32(x, gamma_ref[...], beta_ref[...])
    ln_b = ln.astype(jnp.bfloat16)

    # ONE merged projection (N = 4*HD fills the MXU; one weight push, one MRF drain).
    proj = jnp.dot(ln_b, wqkvg_ref[...], preferred_element_type=jnp.float32)   # [n, 4*HD]
    q = proj[:, 0 * hd:1 * hd].astype(jnp.bfloat16).reshape(ti, sj, hd)
    k = proj[:, 1 * hd:2 * hd].astype(jnp.bfloat16).reshape(ti, sj, hd)
    v = proj[:, 2 * hd:3 * hd].astype(jnp.bfloat16).reshape(ti, sj, hd)
    # Gate: sigmoid then immediate bf16 downcast so no f32 gate stays live over the loop.
    g = jax.nn.sigmoid(proj[:, 3 * hd:4 * hd] + bg_ref[...]).astype(jnp.bfloat16)  # [n, HD]

    # Mask bias computed in-kernel from the raw mask (key-axis bias, broadcast over q & h).
    mb = inf * (mask_ref[0].astype(jnp.float32) - 1.0)                          # [ti, 1, sj]

    for h in range(num_heads):                               # H is small and static
        lo = h * head_dim
        qh = q[:, :, lo:lo + head_dim]
        kh = k[:, :, lo:lo + head_dim]
        vh = v[:, :, lo:lo + head_dim]
        logits = jnp.einsum("tqd,tkd->tqk", qh, kh,
                            preferred_element_type=jnp.float32)                 # [ti, J, J]
        logits = logits + tri_ref[0, h].astype(jnp.float32)[None] + mb          # contiguous bias
        mmax = jnp.max(logits, axis=-1, keepdims=True)
        p = jnp.exp(logits - mmax)
        denom = jnp.sum(p, axis=-1, keepdims=True)
        p = p * pl.reciprocal(denom, approx=True)            # EUP slot; frees VALU
        oh = jnp.einsum("tqk,tkd->tqd", p.astype(jnp.bfloat16), vh,
                        preferred_element_type=jnp.float32)                     # [ti, J, D]
        og_ref[:, lo:lo + head_dim] = oh.astype(jnp.bfloat16).reshape(n, head_dim)

    # Gated output, single K = H*D projection.
    og = og_ref[...] * g                                                         # bf16 [n, HD]
    out = jnp.dot(og, wo_ref[...], preferred_element_type=jnp.float32) + bo_ref[...]
    out_ref[0] = out.reshape(ti, sj, c).astype(out_ref.dtype)


# ---------------------------------------------------------------------------
# Wrapper (glue: transposes for the ending-node variant, weight fusion, casts)
# ---------------------------------------------------------------------------
def triangle_attention(x, mask, params, *, starting=True, inf=1e9,
                       compute_dtype=jnp.bfloat16):
    out_dtype = x.dtype
    if not starting:
        x = jnp.swapaxes(x, -2, -3)
        if mask is not None:
            mask = jnp.swapaxes(mask, -1, -2)
    B, I, J, C = x.shape
    H = int(params["num_heads"])
    D = int(params["head_dim"])
    HD = H * D
    assert I == J, "triangle-bias broadcasting assumes a square pair representation"
    if mask is None:
        mask = jnp.ones((B, I, J), jnp.float32)

    f32, bf16 = jnp.float32, jnp.bfloat16
    # In a real model the pair representation is already bf16; this cast is then a no-op.
    x_b = x if x.dtype == compute_dtype else x.astype(compute_dtype)
    mask4 = mask.astype(bf16).reshape(B, I, 1, J)            # raw mask; bias built in-kernel

    gamma = params["ln_gamma"].reshape(1, C).astype(f32)
    beta = params["ln_beta"].reshape(1, C).astype(f32)
    wtri_t = params["w_tri"].T.astype(f32)                   # [H, C]
    wq = params["wq"] * (1.0 / math.sqrt(D))                 # fold 1/sqrt(D) into Wq
    wqkvg = jnp.concatenate(
        [wq, params["wk"], params["wv"], params["wg"]], axis=1).astype(bf16)    # [C, 4*HD]
    bg = params["bg"].reshape(1, HD).astype(f32)
    wo = params["wo"].astype(bf16)
    bo = params["bo"].reshape(1, C).astype(f32)

    budget = _vmem_budget_bytes()

    # ---- Kernel 1: triangle-bias logits, layout [B, H, I(query), J(key)], bf16 ----
    TI1 = _bias_row_tile(I, J, C, H, budget)
    n_it1 = I // TI1
    tri = pl.pallas_call(
        _tri_bias_kernel,
        out_shape=jax.ShapeDtypeStruct((B, H, I, J), bf16),
        grid=(B, n_it1),
        in_specs=[
            pl.BlockSpec((1, TI1, J, C), lambda b, it: (b, it, 0, 0)),
            pl.BlockSpec((1, C), lambda b, it: (0, 0)),
            pl.BlockSpec((1, C), lambda b, it: (0, 0)),
            pl.BlockSpec((H, C), lambda b, it: (0, 0)),
        ],
        out_specs=pl.BlockSpec((1, H, TI1, J), lambda b, it: (b, 0, it, 0)),
        compiler_params=pltpu.CompilerParams(
            dimension_semantics=("parallel", "parallel"),
            vmem_limit_bytes=budget),
    )(x_b, gamma, beta, wtri_t)

    # ---- Kernel 2: gated MHA, TI rows per step, B and I/TI folded into one axis ----
    x_bytes = jnp.dtype(x_b.dtype).itemsize
    out_bytes = jnp.dtype(out_dtype).itemsize
    TI = _attn_row_tile(B, I, J, C, H, D, x_bytes, out_bytes, budget)
    n_it = I // TI

    def xmap(g):        # x / mask / out follow the (batch, row-tile) decomposition
        return (g // n_it, g % n_it, 0, 0)

    def trimap(g):      # triangle bias depends only on the batch (same block reused -> no re-DMA)
        return (g // n_it, 0, 0, 0)

    def wmap(g):
        return (0, 0)

    kernel = partial(_attn_kernel, num_heads=H, head_dim=D, inf=float(inf))
    out = pl.pallas_call(
        kernel,
        out_shape=jax.ShapeDtypeStruct((B, I, J, C), out_dtype),
        grid=(B * n_it,),                       # single folded parallel axis
        in_specs=[
            pl.BlockSpec((1, TI, J, C), xmap),  # x rows (bf16)
            pl.BlockSpec((1, H, J, J), trimap), # triangle bias, per-head contiguous
            pl.BlockSpec((1, TI, 1, J), xmap),  # raw mask rows
            pl.BlockSpec((1, C), wmap),         # ln gamma
            pl.BlockSpec((1, C), wmap),         # ln beta
            pl.BlockSpec((C, 4 * HD), wmap),    # fused Wq|Wk|Wv|Wg (Wq pre-scaled)
            pl.BlockSpec((1, HD), wmap),        # bg
            pl.BlockSpec((HD, C), wmap),        # Wo
            pl.BlockSpec((1, C), wmap),         # bo
        ],
        out_specs=pl.BlockSpec((1, TI, J, C), xmap),
        scratch_shapes=[pltpu.VMEM((TI * J, HD), jnp.bfloat16)],   # bf16 head-output scratch
        compiler_params=pltpu.CompilerParams(
            dimension_semantics=("parallel",),
            vmem_limit_bytes=budget),
    )(x_b, tri, mask4, gamma, beta, wqkvg, bg, wo, bo)

    if not starting:
        out = jnp.swapaxes(out, -2, -3)
    return out


# ---------------------------------------------------------------------------
# Pure-JAX reference (mirrors the PyTorch module semantics exactly, f32)
# ---------------------------------------------------------------------------
def reference(x, mask, params, *, starting=True, inf=1e9):
    if not starting:
        x = jnp.swapaxes(x, -2, -3)
        mask = jnp.swapaxes(mask, -1, -2)
    B, I, J, C = x.shape
    H, D = params["num_heads"], params["head_dim"]
    mask_bias = (inf * (mask - 1.0))[..., :, None, None, :]        # [B, I, 1, 1, J]
    mu = jnp.mean(x, -1, keepdims=True)
    var = jnp.mean((x - mu) ** 2, -1, keepdims=True)
    ln = (x - mu) / jnp.sqrt(var + LN_EPS) * params["ln_gamma"] + params["ln_beta"]
    tri = ln @ params["w_tri"]                                     # [B, I, J, H]
    tri_bias = jnp.transpose(tri, (0, 3, 1, 2))[:, None]           # [B, 1, H, I, J]
    split = lambda t: t.reshape(B, I, J, H, D)
    q = jnp.swapaxes(split(ln @ params["wq"]), -2, -3) / math.sqrt(D)
    k = jnp.swapaxes(split(ln @ params["wk"]), -2, -3)
    v = jnp.swapaxes(split(ln @ params["wv"]), -2, -3)
    a = jnp.einsum("bihqd,bihkd->bihqk", q, k)
    a = a + mask_bias + tri_bias
    a = jax.nn.softmax(a, axis=-1)
    o = jnp.einsum("bihqk,bihkd->bihqd", a, v)
    o = jnp.swapaxes(o, -2, -3)                                    # [B, I, J, H, D]
    g = jax.nn.sigmoid(split(ln @ params["wg"] + params["bg"]))
    o = (o * g).reshape(B, I, J, H * D)
    out = o @ params["wo"] + params["bo"]
    if not starting:
        out = jnp.swapaxes(out, -2, -3)
    return out


if __name__ == "__main__":
    B, N, C, H = 2, 16, 32, 4
    D = C // H
    key = jax.random.PRNGKey(0)
    ks = jax.random.split(key, 10)

    x = jax.random.normal(ks[0], (B, N, N, C), jnp.float32)
    mask = (jax.random.uniform(ks[1], (B, N, N)) > 0.2).astype(jnp.float32)
    mask = mask.at[..., 0].set(1.0)

    params = dict(
        num_heads=H, head_dim=D,
        ln_gamma=jnp.ones((C,), jnp.float32),
        ln_beta=jnp.zeros((C,), jnp.float32),
        w_tri=0.1 * jax.random.normal(ks[2], (C, H), jnp.float32),
        wq=(1.0 / math.sqrt(C)) * jax.random.normal(ks[3], (C, H * D), jnp.float32),
        wk=(1.0 / math.sqrt(C)) * jax.random.normal(ks[4], (C, H * D), jnp.float32),
        wv=(1.0 / math.sqrt(C)) * jax.random.normal(ks[5], (C, H * D), jnp.float32),
        wg=(1.0 / math.sqrt(C)) * jax.random.normal(ks[6], (C, H * D), jnp.float32),
        bg=0.1 * jax.random.normal(ks[7], (H * D,), jnp.float32),
        wo=(1.0 / math.sqrt(H * D)) * jax.random.normal(ks[8], (H * D, C), jnp.float32),
        bo=0.1 * jax.random.normal(ks[9], (C,), jnp.float32),
    )

    # starting-node variant
    out = triangle_attention(x, mask, params, starting=True)
    out = jax.block_until_ready(out)
    assert out.shape == (B, N, N, C)
    ref = reference(x, mask, params, starting=True)
    err = float(jnp.max(jnp.abs(out - ref)))
    assert err < 5e-2, f"starting=True max abs err {err}"

    # ending-node variant (transpose glue)
    out2 = triangle_attention(x, mask, params, starting=False)
    out2 = jax.block_until_ready(out2)
    ref2 = reference(x, mask, params, starting=False)
    err2 = float(jnp.max(jnp.abs(out2 - ref2)))
    assert err2 < 5e-2, f"starting=False max abs err {err2}"

    print("KERNEL_OK")
</pallas_src>

<mosaic_0001>
module attributes {stable_mosaic.version = 11 : i64} {
  func.func @_tri_bias_kernel(%arg0: i32, %arg1: i32, %arg2: memref<1x16x16x32xbf16, #tpu.memory_space<vmem>>, %arg3: memref<1x32xf32, #tpu.memory_space<vmem>>, %arg4: memref<1x32xf32, #tpu.memory_space<vmem>>, %arg5: memref<4x32xf32, #tpu.memory_space<vmem>>, %arg6: memref<1x4x16x16xbf16, #tpu.memory_space<vmem>>) attributes {dimension_semantics = [#tpu.dimension_semantics<parallel>, #tpu.dimension_semantics<parallel>], iteration_bounds = array<i64: 2, 1>, scalar_prefetch = 0 : i64, scratch_operands = 0 : i64, tpu.core_type = #tpu.core_type<tc>, window_params = [{transform_indices = @transform_0, window_bounds = array<i64: 1, 16, 16, 32>}, {pipeline_mode = #tpu.pipeline_mode<synchronous>, transform_indices = @transform_1, window_bounds = array<i64: 1, 32>}, {pipeline_mode = #tpu.pipeline_mode<synchronous>, transform_indices = @transform_2, window_bounds = array<i64: 1, 32>}, {pipeline_mode = #tpu.pipeline_mode<synchronous>, transform_indices = @transform_3, window_bounds = array<i64: 4, 32>}, {transform_indices = @transform_4, window_bounds = array<i64: 1, 4, 16, 16>}]} {
    %c0 = arith.constant 0 : index
    %c0_0 = arith.constant 0 : index
    %c0_1 = arith.constant 0 : index
    %c0_2 = arith.constant 0 : index
    %0 = vector.load %arg2[%c0, %c0_0, %c0_1, %c0_2] : memref<1x16x16x32xbf16, #tpu.memory_space<vmem>>, vector<1x16x16x32xbf16>
    %1 = vector.shape_cast %0 : vector<1x16x16x32xbf16> to vector<16x16x32xbf16>
    %2 = arith.extf %1 : vector<16x16x32xbf16> to vector<16x16x32xf32>
    %c0_3 = arith.constant 0 : index
    %c0_4 = arith.constant 0 : index
    %3 = vector.load %arg3[%c0_3, %c0_4] : memref<1x32xf32, #tpu.memory_space<vmem>>, vector<1x32xf32>
    %c0_5 = arith.constant 0 : index
    %c0_6 = arith.constant 0 : index
    %4 = vector.load %arg4[%c0_5, %c0_6] : memref<1x32xf32, #tpu.memory_space<vmem>>, vector<1x32xf32>
    %cst = arith.constant dense<0.000000e+00> : vector<16x16xf32>
    %5 = vector.multi_reduction <add>, %2, %cst [2] : vector<16x16x32xf32> to vector<16x16xf32>
    %6 = vector.shape_cast %5 : vector<16x16xf32> to vector<16x16x1xf32>
    %cst_7 = arith.constant 3.200000e+01 : f32
    %7 = vector.broadcast %cst_7 : f32 to vector<16x16x1xf32>
    %8 = arith.divf %6, %7 : vector<16x16x1xf32>
    %9 = vector.broadcast %8 : vector<16x16x1xf32> to vector<16x16x32xf32>
    %10 = arith.subf %2, %9 : vector<16x16x32xf32>
    %11 = arith.mulf %10, %10 : vector<16x16x32xf32>
    %cst_8 = arith.constant dense<0.000000e+00> : vector<16x16xf32>
    %12 = vector.multi_reduction <add>, %11, %cst_8 [2] : vector<16x16x32xf32> to vector<16x16xf32>
    %13 = vector.shape_cast %12 : vector<16x16xf32> to vector<16x16x1xf32>
    %cst_9 = arith.constant 3.200000e+01 : f32
    %14 = vector.broadcast %cst_9 : f32 to vector<16x16x1xf32>
    %15 = arith.divf %13, %14 : vector<16x16x1xf32>
    %16 = vector.broadcast %8 : vector<16x16x1xf32> to vector<16x16x32xf32>
    %17 = arith.subf %2, %16 : vector<16x16x32xf32>
    %cst_10 = arith.constant 9.99999974E-6 : f32
    %18 = vector.broadcast %cst_10 : f32 to vector<16x16x1xf32>
    %19 = arith.addf %15, %18 : vector<16x16x1xf32>
    %20 = math.rsqrt %19 : vector<16x16x1xf32>
    %21 = vector.broadcast %20 : vector<16x16x1xf32> to vector<16x16x32xf32>
    %22 = arith.mulf %17, %21 : vector<16x16x32xf32>
    %23 = vector.shape_cast %3 : vector<1x32xf32> to vector<1x1x32xf32>
    %24 = vector.broadcast %23 : vector<1x1x32xf32> to vector<16x16x32xf32>
    %25 = arith.mulf %22, %24 : vector<16x16x32xf32>
    %26 = vector.shape_cast %4 : vector<1x32xf32> to vector<1x1x32xf32>
    %27 = vector.broadcast %26 : vector<1x1x32xf32> to vector<16x16x32xf32>
    %28 = arith.addf %25, %27 : vector<16x16x32xf32>
    %c0_11 = arith.constant 0 : index
    %c0_12 = arith.constant 0 : index
    %29 = vector.load %arg5[%c0_11, %c0_12] : memref<4x32xf32, #tpu.memory_space<vmem>>, vector<4x32xf32>
    %30 = vector.extract_strided_slice %28 {offsets = [0, 0, 0], sizes = [1, 16, 32], strides = [1, 1, 1]} : vector<16x16x32xf32> to vector<1x16x32xf32>
    %31 = vector.shape_cast %30 : vector<1x16x32xf32> to vector<16x32xf32>
    %cst_13 = arith.constant dense<0.000000e+00> : vector<4x16xf32>
    %32 = tpu.matmul %29, %31, %cst_13 {dimension_numbers = #tpu.dot_dimension_numbers<[1], [1], [0], [0], [0, 0, 1, 0], [], []>} : vector<4x32xf32>, vector<16x32xf32>, vector<4x16xf32> -> vector<4x16xf32>
    %33 = arith.truncf %32 : vector<4x16xf32> to vector<4x16xbf16>
    %c0_14 = arith.constant 0 : index
    %c0_15 = arith.constant 0 : index
    %c0_16 = arith.constant 0 : index
    %c0_17 = arith.constant 0 : index
    %34 = vector.load %arg6[%c0_14, %c0_15, %c0_16, %c0_17] : memref<1x4x16x16xbf16, #tpu.memory_space<vmem>>, vector<1x4x1x16xbf16>
    %35 = vector.shape_cast %34 : vector<1x4x1x16xbf16> to vector<4x16xbf16>
    %36 = vector.shape_cast %33 : vector<4x16xbf16> to vector<1x4x1x16xbf16>
    tpu.vector_store %arg6[%c0_14, %c0_15, %c0_16, %c0_17], %36 {strides = array<i32>} : memref<1x4x16x16xbf16, #tpu.memory_space<vmem>>, vector<1x4x1x16xbf16>,
    %37 = vector.extract_strided_slice %28 {offsets = [1, 0, 0], sizes = [1, 16, 32], strides = [1, 1, 1]} : vector<16x16x32xf32> to vector<1x16x32xf32>
    %38 = vector.shape_cast %37 : vector<1x16x32xf32> to vector<16x32xf32>
    %cst_18 = arith.constant dense<0.000000e+00> : vector<4x16xf32>
    %39 = tpu.matmul %29, %38, %cst_18 {dimension_numbers = #tpu.dot_dimension_numbers<[1], [1], [0], [0], [0, 0, 1, 0], [], []>} : vector<4x32xf32>, vector<16x32xf32>, vector<4x16xf32> -> vector<4x16xf32>
    %40 = arith.truncf %39 : vector<4x16xf32> to vector<4x16xbf16>
    %c0_19 = arith.constant 0 : index
    %c0_20 = arith.constant 0 : index
    %c1 = arith.constant 1 : index
    %c0_21 = arith.constant 0 : index
    %41 = vector.load %arg6[%c0_19, %c0_20, %c1, %c0_21] : memref<1x4x16x16xbf16, #tpu.memory_space<vmem>>, vector<1x4x1x16xbf16>
    %42 = vector.shape_cast %41 : vector<1x4x1x16xbf16> to vector<4x16xbf16>
    %43 = vector.shape_cast %40 : vector<4x16xbf16> to vector<1x4x1x16xbf16>
    tpu.vector_store %arg6[%c0_19, %c0_20, %c1, %c0_21], %43 {strides = array<i32>} : memref<1x4x16x16xbf16, #tpu.memory_space<vmem>>, vector<1x4x1x16xbf16>,
    %44 = vector.extract_strided_slice %28 {offsets = [2, 0, 0], sizes = [1, 16, 32], strides = [1, 1, 1]} : vector<16x16x32xf32> to vector<1x16x32xf32>
    %45 = vector.shape_cast %44 : vector<1x16x32xf32> to vector<16x32xf32>
    %cst_22 = arith.constant dense<0.000000e+00> : vector<4x16xf32>
    %46 = tpu.matmul %29, %45, %cst_22 {dimension_numbers = #tpu.dot_dimension_numbers<[1], [1], [0], [0], [0, 0, 1, 0], [], []>} : vector<4x32xf32>, vector<16x32xf32>, vector<4x16xf32> -> vector<4x16xf32>
    %47 = arith.truncf %46 : vector<4x16xf32> to vector<4x16xbf16>
    %c0_23 = arith.constant 0 : index
    %c0_24 = arith.constant 0 : index
    %c2 = arith.constant 2 : index
    %c0_25 = arith.constant 0 : index
    %48 = vector.load %arg6[%c0_23, %c0_24, %c2, %c0_25] : memref<1x4x16x16xbf16, #tpu.memory_space<vmem>>, vector<1x4x1x16xbf16>
    %49 = vector.shape_cast %48 : vector<1x4x1x16xbf16> to vector<4x16xbf16>
    %50 = vector.shape_cast %47 : vector<4x16xbf16> to vector<1x4x1x16xbf16>
    tpu.vector_store %arg6[%c0_23, %c0_24, %c2, %c0_25], %50 {strides = array<i32>} : memref<1x4x16x16xbf16, #tpu.memory_space<vmem>>, vector<1x4x1x16xbf16>,
    %51 = vector.extract_strided_slice %28 {offsets = [3, 0, 0], sizes = [1, 16, 32], strides = [1, 1, 1]} : vector<16x16x32xf32> to vector<1x16x32xf32>
    %52 = vector.shape_cast %51 : vector<1x16x32xf32> to vector<16x32xf32>
    %cst_26 = arith.constant dense<0.000000e+00> : vector<4x16xf32>
    %53 = tpu.matmul %29, %52, %cst_26 {dimension_numbers = #tpu.dot_dimension_numbers<[1], [1], [0], [0], [0, 0, 1, 0], [], []>} : vector<4x32xf32>, vector<16x32xf32>, vector<4x16xf32> -> vector<4x16xf32>
    %54 = arith.truncf %53 : vector<4x16xf32> to vector<4x16xbf16>
    %c0_27 = arith.constant 0 : index
    %c0_28 = arith.constant 0 : index
    %c3 = arith.constant 3 : index
    %c0_29 = arith.constant 0 : index
    %55 = vector.load %arg6[%c0_27, %c0_28, %c3, %c0_29] : memref<1x4x16x16xbf16, #tpu.memory_space<vmem>>, vector<1x4x1x16xbf16>
    %56 = vector.shape_cast %55 : vector<1x4x1x16xbf16> to vector<4x16xbf16>
    %57 = vector.shape_cast %54 : vector<4x16xbf16> to vector<1x4x1x16xbf16>
    tpu.vector_store %arg6[%c0_27, %c0_28, %c3, %c0_29], %57 {strides = array<i32>} : memref<1x4x16x16xbf16, #tpu.memory_space<vmem>>, vector<1x4x1x16xbf16>,
    %58 = vector.extract_strided_slice %28 {offsets = [4, 0, 0], sizes = [1, 16, 32], strides = [1, 1, 1]} : vector<16x16x32xf32> to vector<1x16x32xf32>
    %59 = vector.shape_cast %58 : vector<1x16x32xf32> to vector<16x32xf32>
    %cst_30 = arith.constant dense<0.000000e+00> : vector<4x16xf32>
    %60 = tpu.matmul %29, %59, %cst_30 {dimension_numbers = #tpu.dot_dimension_numbers<[1], [1], [0], [0], [0, 0, 1, 0], [], []>} : vector<4x32xf32>, vector<16x32xf32>, vector<4x16xf32> -> vector<4x16xf32>
    %61 = arith.truncf %60 : vector<4x16xf32> to vector<4x16xbf16>
    %c0_31 = arith.constant 0 : index
    %c0_32 = arith.constant 0 : index
    %c4 = arith.constant 4 : index
    %c0_33 = arith.constant 0 : index
    %62 = vector.load %arg6[%c0_31, %c0_32, %c4, %c0_33] : memref<1x4x16x16xbf16, #tpu.memory_space<vmem>>, vector<1x4x1x16xbf16>
    %63 = vector.shape_cast %62 : vector<1x4x1x16xbf16> to vector<4x16xbf16>
    %64 = vector.shape_cast %61 : vector<4x16xbf16> to vector<1x4x1x16xbf16>
    tpu.vector_store %arg6[%c0_31, %c0_32, %c4, %c0_33], %64 {strides = array<i32>} : memref<1x4x16x16xbf16, #tpu.memory_space<vmem>>, vector<1x4x1x16xbf16>,
    %65 = vector.extract_strided_slice %28 {offsets = [5, 0, 0], sizes = [1, 16, 32], strides = [1, 1, 1]} : vector<16x16x32xf32> to vector<1x16x32xf32>
    %66 = vector.shape_cast %65 : vector<1x16x32xf32> to vector<16x32xf32>
    %cst_34 = arith.constant dense<0.000000e+00> : vector<4x16xf32>
    %67 = tpu.matmul %29, %66, %cst_34 {dimension_numbers = #tpu.dot_dimension_numbers<[1], [1], [0], [0], [0, 0, 1, 0], [], []>} : vector<4x32xf32>, vector<16x32xf32>, vector<4x16xf32> -> vector<4x16xf32>
    %68 = arith.truncf %67 : vector<4x16xf32> to vector<4x16xbf16>
    %c0_35 = arith.constant 0 : index
    %c0_36 = arith.constant 0 : index
    %c5 = arith.constant 5 : index
    %c0_37 = arith.constant 0 : index
    %69 = vector.load %arg6[%c0_35, %c0_36, %c5, %c0_37] : memref<1x4x16x16xbf16, #tpu.memory_space<vmem>>, vector<1x4x1x16xbf16>
    %70 = vector.shape_cast %69 : vector<1x4x1x16xbf16> to vector<4x16xbf16>
    %71 = vector.shape_cast %68 : vector<4x16xbf16> to vector<1x4x1x16xbf16>
    tpu.vector_store %arg6[%c0_35, %c0_36, %c5, %c0_37], %71 {strides = array<i32>} : memref<1x4x16x16xbf16, #tpu.memory_space<vmem>>, vector<1x4x1x16xbf16>,
    %72 = vector.extract_strided_slice %28 {offsets = [6, 0, 0], sizes = [1, 16, 32], strides = [1, 1, 1]} : vector<16x16x32xf32> to vector<1x16x32xf32>
    %73 = vector.shape_cast %72 : vector<1x16x32xf32> to vector<16x32xf32>
    %cst_38 = arith.constant dense<0.000000e+00> : vector<4x16xf32>
    %74 = tpu.matmul %29, %73, %cst_38 {dimension_numbers = #tpu.dot_dimension_numbers<[1], [1], [0], [0], [0, 0, 1, 0], [], []>} : vector<4x32xf32>, vector<16x32xf32>, vector<4x16xf32> -> vector<4x16xf32>
    %75 = arith.truncf %74 : vector<4x16xf32> to vector<4x16xbf16>
    %c0_39 = arith.constant 0 : index
    %c0_40 = arith.constant 0 : index
    %c6 = arith.constant 6 : index
    %c0_41 = arith.constant 0 : index
    %76 = vector.load %arg6[%c0_39, %c0_40, %c6, %c0_41] : memref<1x4x16x16xbf16, #tpu.memory_space<vmem>>, vector<1x4x1x16xbf16>
    %77 = vector.shape_cast %76 : vector<1x4x1x16xbf16> to vector<4x16xbf16>
    %78 = vector.shape_cast %75 : vector<4x16xbf16> to vector<1x4x1x16xbf16>
    tpu.vector_store %arg6[%c0_39, %c0_40, %c6, %c0_41], %78 {strides = array<i32>} : memref<1x4x16x16xbf16, #tpu.memory_space<vmem>>, vector<1x4x1x16xbf16>,
    %79 = vector.extract_strided_slice %28 {offsets = [7, 0, 0], sizes = [1, 16, 32], strides = [1, 1, 1]} : vector<16x16x32xf32> to vector<1x16x32xf32>
    %80 = vector.shape_cast %79 : vector<1x16x32xf32> to vector<16x32xf32>
    %cst_42 = arith.constant dense<0.000000e+00> : vector<4x16xf32>
    %81 = tpu.matmul %29, %80, %cst_42 {dimension_numbers = #tpu.dot_dimension_numbers<[1], [1], [0], [0], [0, 0, 1, 0], [], []>} : vector<4x32xf32>, vector<16x32xf32>, vector<4x16xf32> -> vector<4x16xf32>
    %82 = arith.truncf %81 : vector<4x16xf32> to vector<4x16xbf16>
    %c0_43 = arith.constant 0 : index
    %c0_44 = arith.constant 0 : index
    %c7 = arith.constant 7 : index
    %c0_45 = arith.constant 0 : index
    %83 = vector.load %arg6[%c0_43, %c0_44, %c7, %c0_45] : memref<1x4x16x16xbf16, #tpu.memory_space<vmem>>, vector<1x4x1x16xbf16>
    %84 = vector.shape_cast %83 : vector<1x4x1x16xbf16> to vector<4x16xbf16>
    %85 = vector.shape_cast %82 : vector<4x16xbf16> to vector<1x4x1x16xbf16>
    tpu.vector_store %arg6[%c0_43, %c0_44, %c7, %c0_45], %85 {strides = array<i32>} : memref<1x4x16x16xbf16, #tpu.memory_space<vmem>>, vector<1x4x1x16xbf16>,
    %86 = vector.extract_strided_slice %28 {offsets = [8, 0, 0], sizes = [1, 16, 32], strides = [1, 1, 1]} : vector<16x16x32xf32> to vector<1x16x32xf32>
    %87 = vector.shape_cast %86 : vector<1x16x32xf32> to vector<16x32xf32>
    %cst_46 = arith.constant dense<0.000000e+00> : vector<4x16xf32>
    %88 = tpu.matmul %29, %87, %cst_46 {dimension_numbers = #tpu.dot_dimension_numbers<[1], [1], [0], [0], [0, 0, 1, 0], [], []>} : vector<4x32xf32>, vector<16x32xf32>, vector<4x16xf32> -> vector<4x16xf32>
    %89 = arith.truncf %88 : vector<4x16xf32> to vector<4x16xbf16>
    %c0_47 = arith.constant 0 : index
    %c0_48 = arith.constant 0 : index
    %c8 = arith.constant 8 : index
    %c0_49 = arith.constant 0 : index
    %90 = vector.load %arg6[%c0_47, %c0_48, %c8, %c0_49] : memref<1x4x16x16xbf16, #tpu.memory_space<vmem>>, vector<1x4x1x16xbf16>
    %91 = vector.shape_cast %90 : vector<1x4x1x16xbf16> to vector<4x16xbf16>
    %92 = vector.shape_cast %89 : vector<4x16xbf16> to vector<1x4x1x16xbf16>
    tpu.vector_store %arg6[%c0_47, %c0_48, %c8, %c0_49], %92 {strides = array<i32>} : memref<1x4x16x16xbf16, #tpu.memory_space<vmem>>, vector<1x4x1x16xbf16>,
    %93 = vector.extract_strided_slice %28 {offsets = [9, 0, 0], sizes = [1, 16, 32], strides = [1, 1, 1]} : vector<16x16x32xf32> to vector<1x16x32xf32>
    %94 = vector.shape_cast %93 : vector<1x16x32xf32> to vector<16x32xf32>
    %cst_50 = arith.constant dense<0.000000e+00> : vector<4x16xf32>
    %95 = tpu.matmul %29, %94, %cst_50 {dimension_numbers = #tpu.dot_dimension_numbers<[1], [1], [0], [0], [0, 0, 1, 0], [], []>} : vector<4x32xf32>, vector<16x32xf32>, vector<4x16xf32> -> vector<4x16xf32>
    %96 = arith.truncf %95 : vector<4x16xf32> to vector<4x16xbf16>
    %c0_51 = arith.constant 0 : index
    %c0_52 = arith.constant 0 : index
    %c9 = arith.constant 9 : index
    %c0_53 = arith.constant 0 : index
    %97 = vector.load %arg6[%c0_51, %c0_52, %c9, %c0_53] : memref<1x4x16x16xbf16, #tpu.memory_space<vmem>>, vector<1x4x1x16xbf16>
    %98 = vector.shape_cast %97 : vector<1x4x1x16xbf16> to vector<4x16xbf16>
    %99 = vector.shape_cast %96 : vector<4x16xbf16> to vector<1x4x1x16xbf16>
    tpu.vector_store %arg6[%c0_51, %c0_52, %c9, %c0_53], %99 {strides = array<i32>} : memref<1x4x16x16xbf16, #tpu.memory_space<vmem>>, vector<1x4x1x16xbf16>,
    %100 = vector.extract_strided_slice %28 {offsets = [10, 0, 0], sizes = [1, 16, 32], strides = [1, 1, 1]} : vector<16x16x32xf32> to vector<1x16x32xf32>
    %101 = vector.shape_cast %100 : vector<1x16x32xf32> to vector<16x32xf32>
    %cst_54 = arith.constant dense<0.000000e+00> : vector<4x16xf32>
    %102 = tpu.matmul %29, %101, %cst_54 {dimension_numbers = #tpu.dot_dimension_numbers<[1], [1], [0], [0], [0, 0, 1, 0], [], []>} : vector<4x32xf32>, vector<16x32xf32>, vector<4x16xf32> -> vector<4x16xf32>
    %103 = arith.truncf %102 : vector<4x16xf32> to vector<4x16xbf16>
    %c0_55 = arith.constant 0 : index
    %c0_56 = arith.constant 0 : index
    %c10 = arith.constant 10 : index
    %c0_57 = arith.constant 0 : index
    %104 = vector.load %arg6[%c0_55, %c0_56, %c10, %c0_57] : memref<1x4x16x16xbf16, #tpu.memory_space<vmem>>, vector<1x4x1x16xbf16>
    %105 = vector.shape_cast %104 : vector<1x4x1x16xbf16> to vector<4x16xbf16>
    %106 = vector.shape_cast %103 : vector<4x16xbf16> to vector<1x4x1x16xbf16>
    tpu.vector_store %arg6[%c0_55, %c0_56, %c10, %c0_57], %106 {strides = array<i32>} : memref<1x4x16x16xbf16, #tpu.memory_space<vmem>>, vector<1x4x1x16xbf16>,
    %107 = vector.extract_strided_slice %28 {offsets = [11, 0, 0], sizes = [1, 16, 32], strides = [1, 1, 1]} : vector<16x16x32xf32> to vector<1x16x32xf32>
    %108 = vector.shape_cast %107 : vector<1x16x32xf32> to vector<16x32xf32>
    %cst_58 = arith.constant dense<0.000000e+00> : vector<4x16xf32>
    %109 = tpu.matmul %29, %108, %cst_58 {dimension_numbers = #tpu.dot_dimension_numbers<[1], [1], [0], [0], [0, 0, 1, 0], [], []>} : vector<4x32xf32>, vector<16x32xf32>, vector<4x16xf32> -> vector<4x16xf32>
    %110 = arith.truncf %109 : vector<4x16xf32> to vector<4x16xbf16>
    %c0_59 = arith.constant 0 : index
    %c0_60 = arith.constant 0 : index
    %c11 = arith.constant 11 : index
    %c0_61 = arith.constant 0 : index
    %111 = vector.load %arg6[%c0_59, %c0_60, %c11, %c0_61] : memref<1x4x16x16xbf16, #tpu.memory_space<vmem>>, vector<1x4x1x16xbf16>
    %112 = vector.shape_cast %111 : vector<1x4x1x16xbf16> to vector<4x16xbf16>
    %113 = vector.shape_cast %110 : vector<4x16xbf16> to vector<1x4x1x16xbf16>
    tpu.vector_store %arg6[%c0_59, %c0_60, %c11, %c0_61], %113 {strides = array<i32>} : memref<1x4x16x16xbf16, #tpu.memory_space<vmem>>, vector<1x4x1x16xbf16>,
    %114 = vector.extract_strided_slice %28 {offsets = [12, 0, 0], sizes = [1, 16, 32], strides = [1, 1, 1]} : vector<16x16x32xf32> to vector<1x16x32xf32>
    %115 = vector.shape_cast %114 : vector<1x16x32xf32> to vector<16x32xf32>
    %cst_62 = arith.constant dense<0.000000e+00> : vector<4x16xf32>
    %116 = tpu.matmul %29, %115, %cst_62 {dimension_numbers = #tpu.dot_dimension_numbers<[1], [1], [0], [0], [0, 0, 1, 0], [], []>} : vector<4x32xf32>, vector<16x32xf32>, vector<4x16xf32> -> vector<4x16xf32>
    %117 = arith.truncf %116 : vector<4x16xf32> to vector<4x16xbf16>
    %c0_63 = arith.constant 0 : index
    %c0_64 = arith.constant 0 : index
    %c12 = arith.constant 12 : index
    %c0_65 = arith.constant 0 : index
    %118 = vector.load %arg6[%c0_63, %c0_64, %c12, %c0_65] : memref<1x4x16x16xbf16, #tpu.memory_space<vmem>>, vector<1x4x1x16xbf16>
    %119 = vector.shape_cast %118 : vector<1x4x1x16xbf16> to vector<4x16xbf16>
    %120 = vector.shape_cast %117 : vector<4x16xbf16> to vector<1x4x1x16xbf16>
    tpu.vector_store %arg6[%c0_63, %c0_64, %c12, %c0_65], %120 {strides = array<i32>} : memref<1x4x16x16xbf16, #tpu.memory_space<vmem>>, vector<1x4x1x16xbf16>,
    %121 = vector.extract_strided_slice %28 {offsets = [13, 0, 0], sizes = [1, 16, 32], strides = [1, 1, 1]} : vector<16x16x32xf32> to vector<1x16x32xf32>
    %122 = vector.shape_cast %121 : vector<1x16x32xf32> to vector<16x32xf32>
    %cst_66 = arith.constant dense<0.000000e+00> : vector<4x16xf32>
    %123 = tpu.matmul %29, %122, %cst_66 {dimension_numbers = #tpu.dot_dimension_numbers<[1], [1], [0], [0], [0, 0, 1, 0], [], []>} : vector<4x32xf32>, vector<16x32xf32>, vector<4x16xf32> -> vector<4x16xf32>
    %124 = arith.truncf %123 : vector<4x16xf32> to vector<4x16xbf16>
    %c0_67 = arith.constant 0 : index
    %c0_68 = arith.constant 0 : index
    %c13 = arith.constant 13 : index
    %c0_69 = arith.constant 0 : index
    %125 = vector.load %arg6[%c0_67, %c0_68, %c13, %c0_69] : memref<1x4x16x16xbf16, #tpu.memory_space<vmem>>, vector<1x4x1x16xbf16>
    %126 = vector.shape_cast %125 : vector<1x4x1x16xbf16> to vector<4x16xbf16>
    %127 = vector.shape_cast %124 : vector<4x16xbf16> to vector<1x4x1x16xbf16>
    tpu.vector_store %arg6[%c0_67, %c0_68, %c13, %c0_69], %127 {strides = array<i32>} : memref<1x4x16x16xbf16, #tpu.memory_space<vmem>>, vector<1x4x1x16xbf16>,
    %128 = vector.extract_strided_slice %28 {offsets = [14, 0, 0], sizes = [1, 16, 32], strides = [1, 1, 1]} : vector<16x16x32xf32> to vector<1x16x32xf32>
    %129 = vector.shape_cast %128 : vector<1x16x32xf32> to vector<16x32xf32>
    %cst_70 = arith.constant dense<0.000000e+00> : vector<4x16xf32>
    %130 = tpu.matmul %29, %129, %cst_70 {dimension_numbers = #tpu.dot_dimension_numbers<[1], [1], [0], [0], [0, 0, 1, 0], [], []>} : vector<4x32xf32>, vector<16x32xf32>, vector<4x16xf32> -> vector<4x16xf32>
    %131 = arith.truncf %130 : vector<4x16xf32> to vector<4x16xbf16>
    %c0_71 = arith.constant 0 : index
    %c0_72 = arith.constant 0 : index
    %c14 = arith.constant 14 : index
    %c0_73 = arith.constant 0 : index
    %132 = vector.load %arg6[%c0_71, %c0_72, %c14, %c0_73] : memref<1x4x16x16xbf16, #tpu.memory_space<vmem>>, vector<1x4x1x16xbf16>
    %133 = vector.shape_cast %132 : vector<1x4x1x16xbf16> to vector<4x16xbf16>
    %134 = vector.shape_cast %131 : vector<4x16xbf16> to vector<1x4x1x16xbf16>
    tpu.vector_store %arg6[%c0_71, %c0_72, %c14, %c0_73], %134 {strides = array<i32>} : memref<1x4x16x16xbf16, #tpu.memory_space<vmem>>, vector<1x4x1x16xbf16>,
    %135 = vector.extract_strided_slice %28 {offsets = [15, 0, 0], sizes = [1, 16, 32], strides = [1, 1, 1]} : vector<16x16x32xf32> to vector<1x16x32xf32>
    %136 = vector.shape_cast %135 : vector<1x16x32xf32> to vector<16x32xf32>
    %cst_74 = arith.constant dense<0.000000e+00> : vector<4x16xf32>
    %137 = tpu.matmul %29, %136, %cst_74 {dimension_numbers = #tpu.dot_dimension_numbers<[1], [1], [0], [0], [0, 0, 1, 0], [], []>} : vector<4x32xf32>, vector<16x32xf32>, vector<4x16xf32> -> vector<4x16xf32>
    %138 = arith.truncf %137 : vector<4x16xf32> to vector<4x16xbf16>
    %c0_75 = arith.constant 0 : index
    %c0_76 = arith.constant 0 : index
    %c15 = arith.constant 15 : index
    %c0_77 = arith.constant 0 : index
    %139 = vector.load %arg6[%c0_75, %c0_76, %c15, %c0_77] : memref<1x4x16x16xbf16, #tpu.memory_space<vmem>>, vector<1x4x1x16xbf16>
    %140 = vector.shape_cast %139 : vector<1x4x1x16xbf16> to vector<4x16xbf16>
    %141 = vector.shape_cast %138 : vector<4x16xbf16> to vector<1x4x1x16xbf16>
    tpu.vector_store %arg6[%c0_75, %c0_76, %c15, %c0_77], %141 {strides = array<i32>} : memref<1x4x16x16xbf16, #tpu.memory_space<vmem>>, vector<1x4x1x16xbf16>,
    return
  }
  func.func @transform_0(%arg0: i32, %arg1: i32) -> (i32, i32, i32, i32) {
    %c0_i32 = arith.constant 0 : i32
    %c0_i32_0 = arith.constant 0 : i32
    %c0_i32_1 = arith.constant 0 : i32
    return %arg0, %arg1, %c0_i32, %c0_i32_0 : i32, i32, i32, i32
  }
  func.func @transform_1(%arg0: i32, %arg1: i32) -> (i32, i32) {
    %c0_i32 = arith.constant 0 : i32
    %c0_i32_0 = arith.constant 0 : i32
    %c0_i32_1 = arith.constant 0 : i32
    return %c0_i32, %c0_i32_0 : i32, i32
  }
  func.func @transform_2(%arg0: i32, %arg1: i32) -> (i32, i32) {
    %c0_i32 = arith.constant 0 : i32
    %c0_i32_0 = arith.constant 0 : i32
    %c0_i32_1 = arith.constant 0 : i32
    return %c0_i32, %c0_i32_0 : i32, i32
  }
  func.func @transform_3(%arg0: i32, %arg1: i32) -> (i32, i32) {
    %c0_i32 = arith.constant 0 : i32
    %c0_i32_0 = arith.constant 0 : i32
    %c0_i32_1 = arith.constant 0 : i32
    return %c0_i32, %c0_i32_0 : i32, i32
  }
  func.func @transform_4(%arg0: i32, %arg1: i32) -> (i32, i32, i32, i32) {
    %c0_i32 = arith.constant 0 : i32
    %c0_i32_0 = arith.constant 0 : i32
    %c0_i32_1 = arith.constant 0 : i32
    return %arg0, %c0_i32, %arg1, %c0_i32_0 : i32, i32, i32, i32
  }
}

</mosaic_0001>

<bundles_post_ra>
// kernel: tpu_custom_call.1
= control target key start
LH: loop header
LB: loop body
LE: loop exit
PB: predicated region body
PF: predicated region fallthrough
CT: control target
= control target key end

     0   :  { %s5315_s0 = inlined_call_operand.hbm [shape: bf16[2,16,16,32], index: 0, kind: input, shape index: {}]   ;;  %s5316_s1 = inlined_call_operand.vmem [shape: f32[1,32], index: 1, kind: input, shape index: {}]   ;;  %s5317_s2 = inlined_call_operand.hbm [shape: f32[1,32], index: 2, kind: input, shape index: {}]   ;;  %s5318_s3 = inlined_call_operand.vmem [shape: f32[4,32], index: 3, kind: input, shape index: {}]   ;;  %s5319_s4 = inlined_call_operand.hbm [shape: bf16[2,4,16,16], index: 4, kind: output, shape index: {}]  }
   0x1   :  { %5323 = sst [smem:[#allocation12_spill]] %s5317_s2 }
   0x2   :  { %9 = vsyncpa [#allocation3], 0 }
   0x3   :  { %11 = vsyncpa [#allocation3 + $0x1], 0 }
   0x4   :  { %12 = vsyncpa [#allocation6], 0 }
   0x5   :  { %13 = vsyncpa [#allocation4], 0 }
   0x6   :  { %15 = vsyncpa [#allocation4 + $0x1], 0  ;;  %s4040_s15 = smov 0   ;;  %s4042_s16 = smov 0  }
   0x7   :  { %s4044_s17 = smov 0   ;;  %s4046_s18 = smov 0  }
   0x8   :  { %s4048_s19 = smov 0   ;;  %s4050_s20 = smov 0  }
   0x9 LB: > { %5324 = sst [smem:[#allocation11_spill]] %s4002_s20  ;;  %s3379_s21 = sadd.s32 4294967295, %s4002_s20   ;;  %s4002_s20 = sphi %s4050_s20, %s21_s20   ;;  %s3998_s19 = sphi %s4048_s19, %s5359_s19   ;;  %s3994_s18 = sphi %s4046_s18, %s5358_s18   ;;  %s3990_s17 = sphi %s4044_s17, %s5357_s17   ;;  %s3986_s16 = sphi %s4042_s16, %s5356_s16   ;;  %s3982_s15 = sphi %s4040_s15, %s5355_s15  }
   0xa   : > { %s3380_s22 = sadd.s32 4294967294, %s4002_s20   ;;  %s42_s23 = sadd.s32 1, %s3990_s17 }
   0xb   : > { %p49_p0 = scmp.ne.s32.totalorder %s3990_s17, %s3986_s16  ;;  %p50_p1 = scmp.eq.s32.totalorder %s4002_s20, 0 }
   0xc   : > { %p55_p2 = scmp.ne.s32.totalorder %s3986_s16, %s3982_s15  ;;  %p4078_p3 = scmp.eq.s32.totalorder %s3379_s21, 0 }
   0xd   : > { %p144_p4 = scmp.eq.s32.totalorder %s3379_s21, 1  ;;  %p4082_p5 = por %p50_p1, %p49_p0 }
   0xe   : > { %p150_p6 = scmp.eq.s32.totalorder %s3380_s22, 1  ;;  %p4088_p7 = por %p4078_p3, %p55_p2 }
   0xf   : > { %p4092_p8 = por %p144_p4, %p49_p0  ;;  %p3381_p10 = scmp.ge.s32.totalorder %s4002_s20, 1 }
  0x10   : > { %p4096_p9 = por %p150_p6, %p55_p2  ;;  %p157_p11 = scmp.lt.s32.totalorder %s4002_s20, 3 }
  0x11   : > { %s5328_s27 = scalar_select %p4092_p8, 1, 0 }
  0x12   : > { %s5329_s28 = scalar_select %p4096_p9, 1, 0 }
  0x13   : > { %p4103_p13 = pnand %p3381_p10, %p157_p11  ;;  %s4004_s30 = smov [#allocation5]  }
  0x14   : > { %s173_s5 = sshll.u32 %s4004_s30, 4  ;;  %p3740_p1 = scmp.lt.s32.totalorder %s4002_s20, 2  ;;  %s174_s5 = int_to_ptr.vmem [resolvable:$true] %s173_s5 }
  0x15   : > { %p3727_p0 = pneg %p4103_p13  ;;  %s33_s8 = sadd.s32 1, %s3998_s19 }
  0x16   : > { %p4112_p4 = pnand %p3740_p1, %p4082_p5  ;;  %p4123_p6 = scmp.ge.s32.totalorder %s33_s8, 2 }
  0x17   : > { %p4118_p2 = pnand %p3727_p0, %p4078_p3  ;;  %s187_s10 = sand.u32 1, %s3990_s17  }
  0x18   : > { %s3875_s11 = scalar_lea.vmem %s174_s5, 16  ;;  %s3882_s12 = scalar_lea.vmem %s174_s5, 32 }
  0x19   : > { %p3866_p10 = pneg %p4118_p2  ;;  %p3876_p11 = scmp.ne.s32.totalorder %s174_s5, %s3875_s11 }
  0x1a   : > { %p3883_p12 = scmp.lt.s32.totalorder %s174_s5, %s174_s5  ;;  %p3884_p9 = scmp.lt.s32.totalorder %s3882_s12, %s3875_s11 }
  0x1b   : > { %p3878_p5 = pnand %p3876_p11, %p3866_p10 }
  0x1c   : > { %p3885_p0 = por %p3884_p9, %p3883_p12 }
  0x1d   : > { %p3879_p1 = pneg %p3878_p5 }
  0x1f   : > { %p3886_p8 = pnand %p3885_p0, %p3879_p1 }
  0x21   : > { %3889 = shalt.err (!%p3886_p8)
}
  0x22   : > { %s5334_s2 = sld [smem:[#allocation12_spill]]  ;;  %s5361_s8 = smov (%p4123_p6, %s33_s8), 0 }
  0x23   : > { %s3384_s21 = sshll.u32 %s187_s10, 7  ;;  %s37_s22 = ssub.s32 %s3998_s19, %s5361_s8 }
  0x24   : > { %p40_p9 = scmp.eq.s32.totalorder %s37_s22, 0  ;;  %s3478_s25 = sshll.u32 %s3998_s19, 11 }
  0x25   : > { %s200_s11 = scalar_lea.hbm %s5315_s0, %s3478_s25  ;;  %s191_s12 = scalar_lea.vmem [#allocation2], %s3384_s21 }
  0x26   : > { %s201_s13 = sshll.u32 %s191_s12, 4  ;;  %s188_s20 = scalar_lea.sflag [#allocation3], %s187_s10  ;;  %s202_s13 = int_to_ptr.vmem [resolvable:$true] %s201_s13 }
  0x27   : > { %s4148_s14 = scalar_select %p40_p9, %s3990_s17, %s42_s23  }
  0x28   : > { %3730 = dma.hbm_to_vmem [thread:$0]  (!%p4118_p2), %s5334_s2, 16, %s174_s5, [#allocation6]  }
  0x29   : > { %p3892_p8 = pneg %p4112_p4  ;;  %s3903_s5 = scalar_lea.vmem %s202_s13, 2048 }
  0x2a   : > { %p3904_p12 = scmp.ne.s32.totalorder %s202_s13, %s3903_s5  ;;  %s4005_s9 = smov [#allocation2]  }
  0x2b   : > { %s3908_s22 = sshll.u32 %s4005_s9, 4  ;;  %s3909_s22 = int_to_ptr.vmem [resolvable:$false] %s3908_s22 }
  0x2c   : > { %p3906_p2 = pnand %p3904_p12, %p3892_p8  ;;  %s3910_s2 = scalar_lea.vmem %s3909_s22, 4096 }
  0x2d   : > { %p3911_p10 = scmp.lt.s32.totalorder %s202_s13, %s3909_s22  ;;  %p3912_p11 = scmp.lt.s32.totalorder %s3910_s2, %s3903_s5 }
  0x2e   : > { %p3907_p6 = pneg %p3906_p2 }
  0x2f   : > { %p3913_p5 = por %p3912_p11, %p3911_p10 }
  0x31   : > { %p3914_p1 = pnand %p3913_p5, %p3907_p6 }
  0x33   : > { %3917 = shalt.err (!%p3914_p1)
}
  0x34   : > { %s4006_s21 = smov 64   ;;  %s4007_s23 = smov 4  }
  0x35   : > { %3734 = dma.hbm_to_vmem [thread:$0]  (!%p4112_p4), %s200_s11, 2048, %s202_s13, %s188_s20, %s4006_s21, %s4006_s21, %s4007_s23  }
  0x36   : > { %213 = sbr.rel (%p4103_p13) target bundleno = 682 (0x2aa), region = 36  ;;  %s4157_s10 = sand.u32 (!%p4103_p13), 1, %s3986_s16  }
  0x37   : > { %s3388_s25 = sshll.u32 (!%p4103_p13), %s4157_s10, 7  ;;  %s216_s30 = scalar_lea.sflag (!%p4103_p13), [#allocation3], %s4157_s10 }
  0x38   : > { %s4161_s2 = scalar_lea.vmem (!%p4103_p13), [#allocation2], %s3388_s25 }
  0x3b   : > { %3969 = dma.done.wait (%p4088_p7), %s216_s30, 2048  }
  0x3c   : > { %3971 = vsyncadd (%p4088_p7), %s216_s30, 4294965248 }
  0x3d   : > { %3973 = dma.done.wait (%p4078_p3), [#allocation6], 16  }
  0x3e   : > { %3975 = vsyncadd (%p4078_p3), [#allocation6], 4294967280  ;;  %v4172_v0 = vld [vmem:[%s4161_s2] sm:$0xff]   ;;  %vm316_vm0 = vcmask 261120   ;;  %v4175_v1 = vld [vmem:[%s4161_s2 + $0x10] sm:$0xff]   ;;  %vm4009_vm1 = vmmov 0  }
  0x3f   : > { %v4178_v2 = vld [vmem:[%s4161_s2 + $0x8] sm:$0xff]   ;;  %v3483_v3 = vunpack.c.h.bf16 %v4172_v0  ;;  %v3491_v4 = vunpack.c.h.bf16 %v4175_v1  ;;  %v3482_v5 = vunpack.c.l.bf16 %v4172_v0  ;;  %v3490_v11 = vunpack.c.l.bf16 %v4175_v1  ;;  %v4199_v13 = vld [vmem:[%s4161_s2 + $0x20] sm:$0xff]   ;;  %v4202_v14 = vld [vmem:[%s4161_s2 + $0x18] sm:$0xff]   ;;  %s3390_s6 = sshll.u32 %s4157_s10, 5  ;;  %s3479_s11 = sshll.u32 %s3994_s18, 9 }
  0x40   : > { %v3487_v6 = vunpack.c.h.bf16 %v4178_v2  ;;  %v3486_v12 = vunpack.c.l.bf16 %v4178_v2  ;;  %v3499_v17 = vunpack.c.h.bf16 %v4199_v13  ;;  %v3495_v18 = vunpack.c.h.bf16 %v4202_v14  ;;  %v4221_v23 = vld [vmem:[%s4161_s2 + $0x30] sm:$0xff]   ;;  %v4224_v24 = vld [vmem:[%s4161_s2 + $0x28] sm:$0xff]   ;;  %v4243_v33 = vld [vmem:[%s4161_s2 + $0x40] sm:$0xff]   ;;  %s4820_s7 = scalar_lea.vmem [#allocation7], %s3390_s6  ;;  %s5259_s5 = scalar_lea.hbm %s5319_s4, %s3479_s11 }
  0x41   : > { %v320_v7 = vsel %vm316_vm0, %v3483_v3, 0.0  ;;  %v332_v8 = vsel %vm316_vm0, %v3491_v4, 0.0  ;;  %v317_v9 = vsel %vm316_vm0, %v3482_v5, 0.0  ;;  %v329_v15 = vsel %vm316_vm0, %v3490_v11, 0.0  ;;  %v4246_v34 = vld [vmem:[%s4161_s2 + $0x38] sm:$0xff]   ;;  %v4265_v43 = vld [vmem:[%s4161_s2 + $0x50] sm:$0xff]  }
  0x42   : > { %321 = vadd.xlane.f32.xlu0 %v320_v7  ;;  %333 = vadd.xlane.f32.xlu1 %v332_v8  ;;  %v326_v10 = vsel %vm316_vm0, %v3487_v6, 0.0  ;;  %v323_v16 = vsel %vm316_vm0, %v3486_v12, 0.0  ;;  %v344_v19 = vsel %vm316_vm0, %v3499_v17, 0.0  ;;  %v338_v20 = vsel %vm316_vm0, %v3495_v18, 0.0  ;;  %v4268_v44 = vld [vmem:[%s4161_s2 + $0x48] sm:$0xff]   ;;  %v4287_v53 = vld [vmem:[%s4161_s2 + $0x60] sm:$0xff]  }
  0x43   : > { %v3498_v21 = vunpack.c.l.bf16 %v4199_v13  ;;  %v3494_v22 = vunpack.c.l.bf16 %v4202_v14  ;;  %v3507_v27 = vunpack.c.h.bf16 %v4221_v23  ;;  %v3503_v28 = vunpack.c.h.bf16 %v4224_v24  ;;  %v4290_v54 = vld [vmem:[%s4161_s2 + $0x58] sm:$0xff]   ;;  %v4309_v63 = vld [vmem:[%s4161_s2 + $0x70] sm:$0xff]   ;;  %v4312_v7 = vld [vmem:[%s4161_s2 + $0x68] sm:$0xff]   ;;  %s3282_s12 = sshll.u32 %s4820_s7, 4  ;;  %s3267_s9 = scalar_lea.sflag [#allocation4], %s4157_s10  ;;  %s5261_s12 = int_to_ptr.vmem [resolvable:$true] %s3282_s12 }
  0x44   : > { %v3506_v31 = vunpack.c.l.bf16 %v4221_v23  ;;  %v3502_v32 = vunpack.c.l.bf16 %v4224_v24  ;;  %v3515_v37 = vunpack.c.h.bf16 %v4243_v33  ;;  %v3511_v38 = vunpack.c.h.bf16 %v4246_v34  ;;  %s3918_s22 = scalar_lea.vmem %s5261_s12, 512  ;;  %p5351_p7 = scmp.ne.s32.totalorder %s5328_s27, 0 }
  0x45   : > { %v341_v25 = vsel %vm316_vm0, %v3498_v21, 0.0  ;;  %v335_v26 = vsel %vm316_vm0, %v3494_v22, 0.0  ;;  %v356_v29 = vsel %vm316_vm0, %v3507_v27, 0.0  ;;  %v350_v30 = vsel %vm316_vm0, %v3503_v28, 0.0  ;;  %p3919_p3 = scmp.ne.s32.totalorder %s5261_s12, %s3918_s22  ;;  %s4012_s21 = smov [#allocation7]  }
  0x46   : > { %318 = vadd.xlane.f32.xlu0 %v317_v9  ;;  %327 = vadd.xlane.f32.xlu1 %v326_v10  ;;  %v353_v35 = vsel %vm316_vm0, %v3506_v31, 0.0  ;;  %v347_v36 = vsel %vm316_vm0, %v3502_v32, 0.0  ;;  %v368_v39 = vsel %vm316_vm0, %v3515_v37, 0.0  ;;  %v362_v40 = vsel %vm316_vm0, %v3511_v38, 0.0  ;;  %s3922_s23 = sshll.u32 %s4012_s21, 4  ;;  %s3923_s23 = int_to_ptr.vmem [resolvable:$false] %s3922_s23 }
  0x47   : > { %v3514_v41 = vunpack.c.l.bf16 %v4243_v33  ;;  %v3510_v42 = vunpack.c.l.bf16 %v4246_v34  ;;  %v3523_v47 = vunpack.c.h.bf16 %v4265_v43  ;;  %v3519_v48 = vunpack.c.h.bf16 %v4268_v44  ;;  %p3920_p13 = pnand %p3919_p3, %p5351_p7  ;;  %s3924_s25 = scalar_lea.vmem %s3923_s23, 1024 }
  0x48   : > { %v3522_v51 = vunpack.c.l.bf16 %v4265_v43  ;;  %v3518_v52 = vunpack.c.l.bf16 %v4268_v44  ;;  %v3531_v57 = vunpack.c.h.bf16 %v4287_v53  ;;  %v3527_v58 = vunpack.c.h.bf16 %v4290_v54  ;;  %p3925_p0 = scmp.lt.s32.totalorder %s5261_s12, %s3923_s23  ;;  %p3926_p9 = scmp.lt.s32.totalorder %s3924_s25, %s3918_s22 }
  0x49   : > { %v365_v45 = vsel %vm316_vm0, %v3514_v41, 0.0  ;;  %v359_v46 = vsel %vm316_vm0, %v3510_v42, 0.0  ;;  %v380_v49 = vsel %vm316_vm0, %v3523_v47, 0.0  ;;  %v374_v50 = vsel %vm316_vm0, %v3519_v48, 0.0  ;;  %p3921_p4 = pneg %p3920_p13 }
  0x4a   : > { %330 = vadd.xlane.f32.xlu0 %v329_v15  ;;  %324 = vadd.xlane.f32.xlu1 %v323_v16  ;;  %v377_v55 = vsel %vm316_vm0, %v3522_v51, 0.0  ;;  %v371_v56 = vsel %vm316_vm0, %v3518_v52, 0.0  ;;  %v392_v59 = vsel %vm316_vm0, %v3531_v57, 0.0  ;;  %v386_v60 = vsel %vm316_vm0, %v3527_v58, 0.0  ;;  %p3927_p8 = por %p3926_p9, %p3925_p0 }
  0x4b   : > { %v3530_v61 = vunpack.c.l.bf16 %v4287_v53  ;;  %v3526_v62 = vunpack.c.l.bf16 %v4290_v54  ;;  %v3539_v10 = vunpack.c.h.bf16 %v4309_v63  ;;  %v3535_v15 = vunpack.c.h.bf16 %v4312_v7 }
  0x4c   : > { %vm954_vm2 = vcmask 122880   ;;  %vm955_vm3 = vsmask.f32 256  ;;  %vm1109_vm5 = vsmask.f32 7938  ;;  %vm1263_vm6 = vcmask 123905   ;;  %p3928_p12 = pnand %p3927_p8, %p3921_p4 }
  0x4d   : > { %v389_v8 = vsel %vm316_vm0, %v3530_v61, 0.0  ;;  %v383_v9 = vsel %vm316_vm0, %v3526_v62, 0.0  ;;  %v404_v16 = vsel %vm316_vm0, %v3539_v10, 0.0  ;;  %vm4816_vm4 = vmand %vm954_vm2, %vm955_vm3  ;;  %vm1264_vm7 = vsmask.f32 1280 }
  0x4e   : > { %345 = vadd.xlane.f32.xlu0 %v344_v19  ;;  %339 = vadd.xlane.f32.xlu1 %v338_v20  ;;  %v398_v19 = vsel %vm316_vm0, %v3535_v15, 0.0  ;;  %v3538_v20 = vunpack.c.l.bf16 %v4309_v63  ;;  %vm1418_vm8 = vsmask.f32 7942  ;;  %vm4850_vm9 = vmand %vm954_vm2, %vm1109_vm5  ;;  %vm1572_vm10 = vcmask 124930  }
  0x4f   : > { %vm4857_vm11 = vmand %vm1263_vm6, %vm1264_vm7  ;;  %vm1573_vm12 = vsmask.f32 2304  ;;  %vm1727_vm13 = vsmask.f32 7946  ;;  %vm2036_vm5 = vsmask.f32 7950 }
  0x50   : > { %vm4911_vm14 = vmand %vm1263_vm6, %vm1418_vm8 }
  0x51   : > { %vm4920_vm15 = vmand %vm1572_vm10, %vm1573_vm12 }
  0x52   : > { %342 = vadd.xlane.f32.xlu0 %v341_v25  ;;  %336 = vadd.xlane.f32.xlu1 %v335_v26  ;;  %v3534_v25 = vunpack.c.l.bf16 %v4312_v7  ;;  %v4331_v26 = vld [vmem:[%s4161_s2 + $0x78] sm:$0xff]   ;;  %vm4970_vm2 = vmand %vm1572_vm10, %vm1727_vm13 }
  0x56   : > { %357 = vadd.xlane.f32.xlu0 %v356_v29  ;;  %351 = vadd.xlane.f32.xlu1 %v350_v30  ;;  %v401_v29 = vsel %vm316_vm0, %v3538_v20, 0.0  ;;  %v395_v30 = vsel %vm316_vm0, %v3534_v25, 0.0 }
  0x5a   : > { %354 = vadd.xlane.f32.xlu0 %v353_v35  ;;  %348 = vadd.xlane.f32.xlu1 %v347_v36  ;;  %v3543_v35 = vunpack.c.h.bf16 %v4331_v26  ;;  %v3542_v36 = vunpack.c.l.bf16 %v4331_v26 }
  0x5e   : > { %369 = vadd.xlane.f32.xlu0 %v368_v39  ;;  %363 = vadd.xlane.f32.xlu1 %v362_v40  ;;  %v410_v39 = vsel %vm316_vm0, %v3543_v35, 0.0  ;;  %v407_v40 = vsel %vm316_vm0, %v3542_v36, 0.0 }
  0x62   : > { %366 = vadd.xlane.f32.xlu0 %v365_v45  ;;  %360 = vadd.xlane.f32.xlu1 %v359_v46 }
  0x66   : > { %381 = vadd.xlane.f32.xlu0 %v380_v49  ;;  %375 = vadd.xlane.f32.xlu1 %v374_v50 }
  0x6a   : > { %378 = vadd.xlane.f32.xlu0 %v377_v55  ;;  %372 = vadd.xlane.f32.xlu1 %v371_v56 }
  0x6e   : > { %393 = vadd.xlane.f32.xlu0 %v392_v59  ;;  %387 = vadd.xlane.f32.xlu1 %v386_v60 }
  0x72   : > { %390 = vadd.xlane.f32.xlu0 %v389_v8  ;;  %384 = vadd.xlane.f32.xlu1 %v383_v9 }
  0x76   : > { %405 = vadd.xlane.f32.xlu0 %v404_v16  ;;  %399 = vadd.xlane.f32.xlu1 %v398_v19 }
  0x7a   : > { %402 = vadd.xlane.f32.xlu0 %v401_v29  ;;  %396 = vadd.xlane.f32.xlu1 %v395_v30 }
  0x7e   : > { %411 = vadd.xlane.f32.xlu0 %v410_v39  ;;  %408 = vadd.xlane.f32.xlu1 %v407_v40 }
  0xcb   : > { %v322_v45 = vpop.xlane.xlu0 %321  ;;  %v334_v46 = vpop.xlane.xlu1 %333 }
  0xcc   : > { %v415_v49 = vmul.f32 0.03125, %v322_v45  ;;  %v419_v50 = vmul.f32 0.03125, %v334_v46 }
  0xce   : > { %v4349_v55 = vsub.f32 %v3483_v3, %v415_v49  ;;  %v4353_v56 = vsub.f32 %v3491_v4, %v419_v50 }
  0xcf   : > { %v319_v59 = vpop.xlane.xlu0 %318  ;;  %v328_v60 = vpop.xlane.xlu1 %327 }
  0xd0   : > { %v414_v8 = vmul.f32 0.03125, %v319_v59  ;;  %v417_v9 = vmul.f32 0.03125, %v328_v60  ;;  %v479_v16 = vmul.f32 %v4349_v55, %v4349_v55  ;;  %v483_v19 = vmul.f32 %v4353_v56, %v4353_v56 }
  0xd2   : > { %v4361_v29 = vsub.f32 %v3482_v5, %v414_v8  ;;  %v4365_v3 = vsub.f32 %v3487_v6, %v417_v9  ;;  %v513_v4 = vsel %vm316_vm0, %v479_v16, 0.0  ;;  %v525_v40 = vsel %vm316_vm0, %v483_v19, 0.0 }
  0xd3   : > { %514 = vadd.xlane.f32.xlu0 %v513_v4  ;;  %v331_v30 = vpop.xlane.xlu0 %330  ;;  %v325_v39 = vpop.xlane.xlu1 %324 }
  0xd4   : > { %v418_v45 = vmul.f32 0.03125, %v331_v30  ;;  %v416_v46 = vmul.f32 0.03125, %v325_v39  ;;  %v478_v49 = vmul.f32 %v4361_v29, %v4361_v29  ;;  %v481_v0 = vmul.f32 %v4365_v3, %v4365_v3 }
  0xd6   : > { %v4375_v5 = vsub.f32 %v3490_v11, %v418_v45  ;;  %v4379_v6 = vsub.f32 %v3486_v12, %v416_v46  ;;  %v510_v50 = vsel %vm316_vm0, %v478_v49, 0.0  ;;  %v519_v8 = vsel %vm316_vm0, %v481_v0, 0.0 }
  0xd7   : > { %526 = vadd.xlane.f32.xlu0 %v525_v40  ;;  %511 = vadd.xlane.f32.xlu1 %v510_v50  ;;  %v346_v59 = vpop.xlane.xlu0 %345  ;;  %v340_v60 = vpop.xlane.xlu1 %339 }
  0xd8   : > { %v423_v9 = vmul.f32 0.03125, %v346_v59  ;;  %v421_v16 = vmul.f32 0.03125, %v340_v60  ;;  %v482_v19 = vmul.f32 %v4375_v5, %v4375_v5  ;;  %v480_v1 = vmul.f32 %v4379_v6, %v4379_v6 }
  0xda   : > { %v4389_v2 = vsub.f32 %v3499_v17, %v423_v9  ;;  %v4393_v11 = vsub.f32 %v3495_v18, %v421_v16  ;;  %v522_v12 = vsel %vm316_vm0, %v482_v19, 0.0  ;;  %v516_v39 = vsel %vm316_vm0, %v480_v1, 0.0 }
  0xdb   : > { %520 = vadd.xlane.f32.xlu1 %v519_v8  ;;  %523 = vadd.xlane.f32.xlu0 %v522_v12  ;;  %v343_v4 = vpop.xlane.xlu0 %342  ;;  %v337_v30 = vpop.xlane.xlu1 %336 }
  0xdc   : > { %v422_v40 = vmul.f32 0.03125, %v343_v4  ;;  %v420_v45 = vmul.f32 0.03125, %v337_v30  ;;  %v487_v46 = vmul.f32 %v4389_v2, %v4389_v2  ;;  %v485_v17 = vmul.f32 %v4393_v11, %v4393_v11 }
  0xde   : > { %v4403_v18 = vsub.f32 %v3498_v21, %v422_v40  ;;  %v4407_v49 = vsub.f32 %v3494_v22, %v420_v45  ;;  %v537_v0 = vsel %vm316_vm0, %v487_v46, 0.0  ;;  %v531_v60 = vsel %vm316_vm0, %v485_v17, 0.0 }
  0xdf   : > { %517 = vadd.xlane.f32.xlu1 %v516_v39  ;;  %538 = vadd.xlane.f32.xlu0 %v537_v0  ;;  %v358_v50 = vpop.xlane.xlu0 %357  ;;  %v352_v59 = vpop.xlane.xlu1 %351 }
  0xe0   : > { %v427_v8 = vmul.f32 0.03125, %v358_v50  ;;  %v425_v9 = vmul.f32 0.03125, %v352_v59  ;;  %v486_v16 = vmul.f32 %v4403_v18, %v4403_v18  ;;  %v484_v13 = vmul.f32 %v4407_v49, %v4407_v49 }
  0xe2   : > { %v4417_v14 = vsub.f32 %v3507_v27, %v427_v8  ;;  %v4421_v21 = vsub.f32 %v3503_v28, %v425_v9  ;;  %v534_v22 = vsel %vm316_vm0, %v486_v16, 0.0  ;;  %v528_v12 = vsel %vm316_vm0, %v484_v13, 0.0 }
  0xe3   : > { %532 = vadd.xlane.f32.xlu1 %v531_v60  ;;  %535 = vadd.xlane.f32.xlu0 %v534_v22  ;;  %v355_v19 = vpop.xlane.xlu0 %354  ;;  %v349_v1 = vpop.xlane.xlu1 %348 }
  0xe4   : > { %v426_v4 = vmul.f32 0.03125, %v355_v19  ;;  %v424_v30 = vmul.f32 0.03125, %v349_v1  ;;  %v491_v39 = vmul.f32 %v4417_v14, %v4417_v14  ;;  %v489_v27 = vmul.f32 %v4421_v21, %v4421_v21 }
  0xe6   : > { %v4431_v28 = vsub.f32 %v3506_v31, %v426_v4  ;;  %v4435_v40 = vsub.f32 %v3502_v32, %v424_v30  ;;  %v549_v45 = vsel %vm316_vm0, %v491_v39, 0.0  ;;  %v543_v0 = vsel %vm316_vm0, %v489_v27, 0.0 }
  0xe7   : > { %529 = vadd.xlane.f32.xlu1 %v528_v12  ;;  %550 = vadd.xlane.f32.xlu0 %v549_v45  ;;  %v370_v46 = vpop.xlane.xlu0 %369  ;;  %v364_v17 = vpop.xlane.xlu1 %363 }
  0xe8   : > { %v431_v50 = vmul.f32 0.03125, %v370_v46  ;;  %v429_v59 = vmul.f32 0.03125, %v364_v17  ;;  %v490_v60 = vmul.f32 %v4431_v28, %v4431_v28  ;;  %v488_v23 = vmul.f32 %v4435_v40, %v4435_v40 }
  0xea   : > { %v4445_v24 = vsub.f32 %v3515_v37, %v431_v50  ;;  %v4449_v31 = vsub.f32 %v3511_v38, %v429_v59  ;;  %v546_v32 = vsel %vm316_vm0, %v490_v60, 0.0  ;;  %v540_v16 = vsel %vm316_vm0, %v488_v23, 0.0 }
  0xeb   : > { %544 = vadd.xlane.f32.xlu1 %v543_v0  ;;  %547 = vadd.xlane.f32.xlu0 %v546_v32  ;;  %v367_v8 = vpop.xlane.xlu0 %366  ;;  %v361_v9 = vpop.xlane.xlu1 %360 }
  0xec   : > { %v430_v13 = vmul.f32 0.03125, %v367_v8  ;;  %v428_v22 = vmul.f32 0.03125, %v361_v9  ;;  %v495_v19 = vmul.f32 %v4445_v24, %v4445_v24  ;;  %v493_v37 = vmul.f32 %v4449_v31, %v4449_v31 }
  0xed   : > { %v4008_v9 = vmov 0.0  }
  0xee   : > { %v4459_v38 = vsub.f32 %v3514_v41, %v430_v13  ;;  %v4463_v1 = vsub.f32 %v3510_v42, %v428_v22  ;;  %v561_v12 = vsel %vm316_vm0, %v495_v19, 0.0  ;;  %v555_v39 = vsel %vm316_vm0, %v493_v37, 0.0  ;;  %3607 = vmatprep.subr.mxu0 %v4008_v9  ;;  %3614 = vmatprep.subr.mxu1 %v4008_v9 }
  0xef   : > { %541 = vadd.xlane.f32.xlu1 %v540_v16  ;;  %562 = vadd.xlane.f32.xlu0 %v561_v12  ;;  %v382_v4 = vpop.xlane.xlu0 %381  ;;  %v376_v30 = vpop.xlane.xlu1 %375 }
  0xf0   : > { %v435_v27 = vmul.f32 0.03125, %v382_v4  ;;  %v433_v45 = vmul.f32 0.03125, %v376_v30  ;;  %v494_v46 = vmul.f32 %v4459_v38, %v4459_v38  ;;  %v492_v33 = vmul.f32 %v4463_v1, %v4463_v1  ;;  %3611 = vmatprep.mubr.msk.f32.mxu0 %vm4009_vm1, %v4008_v9  ;;  %3618 = vmatprep.mubr.msk.f32.mxu1 %vm4009_vm1, %v4008_v9 }
  0xf2   : > { %v4473_v34 = vsub.f32 %v3523_v47, %v435_v27  ;;  %v4477_v41 = vsub.f32 %v3519_v48, %v433_v45  ;;  %v558_v42 = vsel %vm316_vm0, %v494_v46, 0.0  ;;  %v552_v50 = vsel %vm316_vm0, %v492_v33, 0.0 }
  0xf3   : > { %556 = vadd.xlane.f32.xlu1 %v555_v39  ;;  %559 = vadd.xlane.f32.xlu0 %v558_v42  ;;  %v379_v17 = vpop.xlane.xlu0 %378  ;;  %v373_v0 = vpop.xlane.xlu1 %372 }
  0xf4   : > { %v434_v59 = vmul.f32 0.03125, %v379_v17  ;;  %v432_v60 = vmul.f32 0.03125, %v373_v0  ;;  %v499_v23 = vmul.f32 %v4473_v34, %v4473_v34  ;;  %v497_v47 = vmul.f32 %v4477_v41, %v4477_v41 }
  0xf6   : > { %v4487_v48 = vsub.f32 %v3522_v51, %v434_v59  ;;  %v4491_v32 = vsub.f32 %v3518_v52, %v432_v60  ;;  %v573_v8 = vsel %vm316_vm0, %v499_v23, 0.0  ;;  %v567_v22 = vsel %vm316_vm0, %v497_v47, 0.0 }
  0xf7   : > { %553 = vadd.xlane.f32.xlu1 %v552_v50  ;;  %574 = vadd.xlane.f32.xlu0 %v573_v8  ;;  %v394_v16 = vpop.xlane.xlu0 %393  ;;  %v388_v13 = vpop.xlane.xlu1 %387 }
  0xf8   : > { %v439_v43 = vmul.f32 0.03125, %v394_v16  ;;  %v437_v51 = vmul.f32 0.03125, %v388_v13  ;;  %v498_v44 = vmul.f32 %v4487_v48, %v4487_v48  ;;  %v496_v52 = vmul.f32 %v4491_v32, %v4491_v32 }
  0xfa   : > { %v4503_v19 = vsub.f32 %v3531_v57, %v439_v43  ;;  %v4507_v37 = vsub.f32 %v3527_v58, %v437_v51  ;;  %v570_v12 = vsel %vm316_vm0, %v498_v44, 0.0  ;;  %v564_v39 = vsel %vm316_vm0, %v496_v52, 0.0 }
  0xfb   : > { %568 = vadd.xlane.f32.xlu1 %v567_v22  ;;  %571 = vadd.xlane.f32.xlu0 %v570_v12  ;;  %v391_v4 = vpop.xlane.xlu0 %390  ;;  %v385_v30 = vpop.xlane.xlu1 %384 }
  0xfc   : > { %v438_v27 = vmul.f32 0.03125, %v391_v4  ;;  %v436_v45 = vmul.f32 0.03125, %v385_v30  ;;  %v503_v46 = vmul.f32 %v4503_v19, %v4503_v19  ;;  %v501_v57 = vmul.f32 %v4507_v37, %v4507_v37 }
  0xfe   : > { %v4521_v58 = vsub.f32 %v3530_v61, %v438_v27  ;;  %v4525_v33 = vsub.f32 %v3526_v62, %v436_v45  ;;  %v585_v42 = vsel %vm316_vm0, %v503_v46, 0.0  ;;  %v579_v50 = vsel %vm316_vm0, %v501_v57, 0.0 }
  0xff   : > { %565 = vadd.xlane.f32.xlu1 %v564_v39  ;;  %586 = vadd.xlane.f32.xlu0 %v585_v42  ;;  %v406_v17 = vpop.xlane.xlu0 %405  ;;  %v400_v0 = vpop.xlane.xlu1 %399 }
 0x100   : > { %v443_v59 = vmul.f32 0.03125, %v406_v17  ;;  %v441_v60 = vmul.f32 0.03125, %v400_v0  ;;  %v502_v23 = vmul.f32 %v4521_v58, %v4521_v58  ;;  %v500_v53 = vmul.f32 %v4525_v33, %v4525_v33 }
 0x102   : > { %v4535_v54 = vsub.f32 %v3539_v10, %v443_v59  ;;  %v4539_v61 = vsub.f32 %v3535_v15, %v441_v60  ;;  %v582_v62 = vsel %vm316_vm0, %v502_v23, 0.0  ;;  %v576_v16 = vsel %vm316_vm0, %v500_v53, 0.0 }
 0x103   : > { %580 = vadd.xlane.f32.xlu1 %v579_v50  ;;  %583 = vadd.xlane.f32.xlu0 %v582_v62  ;;  %v403_v47 = vpop.xlane.xlu0 %402  ;;  %v397_v8 = vpop.xlane.xlu1 %396 }
 0x104   : > { %v442_v13 = vmul.f32 0.03125, %v403_v47  ;;  %v440_v22 = vmul.f32 0.03125, %v397_v8  ;;  %v507_v43 = vmul.f32 %v4535_v54, %v4535_v54  ;;  %v505_v10 = vmul.f32 %v4539_v61, %v4539_v61 }
 0x106   : > { %v4549_v15 = vsub.f32 %v3538_v20, %v442_v13  ;;  %v4553_v51 = vsub.f32 %v3534_v25, %v440_v22  ;;  %v597_v44 = vsel %vm316_vm0, %v507_v43, 0.0  ;;  %v591_v4 = vsel %vm316_vm0, %v505_v10, 0.0 }
 0x107   : > { %577 = vadd.xlane.f32.xlu1 %v576_v16  ;;  %598 = vadd.xlane.f32.xlu0 %v597_v44  ;;  %v412_v52 = vpop.xlane.xlu0 %411  ;;  %v409_v12 = vpop.xlane.xlu1 %408 }
 0x108   : > { %v445_v30 = vmul.f32 0.03125, %v412_v52  ;;  %v444_v39 = vmul.f32 0.03125, %v409_v12  ;;  %v506_v27 = vmul.f32 %v4549_v15, %v4549_v15  ;;  %v504_v63 = vmul.f32 %v4553_v51, %v4553_v51 }
 0x10a   : > { %v4563_v7 = vsub.f32 %v3543_v35, %v445_v30  ;;  %v4567_v20 = vsub.f32 %v3542_v36, %v444_v39  ;;  %v594_v25 = vsel %vm316_vm0, %v506_v27, 0.0  ;;  %v588_v45 = vsel %vm316_vm0, %v504_v63, 0.0 }
 0x10b   : > { %592 = vadd.xlane.f32.xlu1 %v591_v4  ;;  %595 = vadd.xlane.f32.xlu0 %v594_v25 }
 0x10c   : > { %v509_v46 = vmul.f32 %v4563_v7, %v4563_v7  ;;  %v508_v57 = vmul.f32 %v4567_v20, %v4567_v20 }
 0x10e   : > { %v603_v42 = vsel %vm316_vm0, %v509_v46, 0.0  ;;  %v600_v26 = vsel %vm316_vm0, %v508_v57, 0.0 }
 0x10f   : > { %589 = vadd.xlane.f32.xlu1 %v588_v45  ;;  %604 = vadd.xlane.f32.xlu0 %v603_v42  ;;  %v4580_v45 = vld [vmem:[%s5316_s1] ss:$0 sm:$0xff] }
 0x113   : > { %601 = vadd.xlane.f32.xlu1 %v600_v26 }
 0x15c   : > { %v515_v35 = vpop.xlane.xlu0 %514 }
 0x15d   : > { %v607_v36 = vmul.f32 0.03125, %v515_v35 }
 0x15f   : > { %v639_v17 = vadd.f32 1e-05, %v607_v36  ;;  %v4583_v36 = vld [vmem:[#allocation5] ss:$0 sm:$0xff] }
 0x160   : > { %v512_v0 = vpop.xlane.xlu1 %511  ;;  %v527_v50 = vpop.xlane.xlu0 %526 }
 0x161   : > { %3800 = vrsqrt.f32 %v639_v17  ;;  %v606_v59 = vmul.f32 0.03125, %v512_v0  ;;  %v611_v60 = vmul.f32 0.03125, %v527_v50 }
 0x163   : > { %v638_v23 = vadd.f32 1e-05, %v606_v59  ;;  %v643_v53 = vadd.f32 1e-05, %v611_v60 }
 0x164   : > { %v521_v62 = vpop.xlane.xlu1 %520  ;;  %v524_v47 = vpop.xlane.xlu0 %523 }
 0x165   : > { %3802 = vrsqrt.f32 %v638_v23  ;;  %v609_v8 = vmul.f32 0.03125, %v521_v62  ;;  %v610_v16 = vmul.f32 0.03125, %v524_v47 }
 0x166   : > { %3804 = vrsqrt.f32 %v643_v53 }
 0x167   : > { %v641_v13 = vadd.f32 1e-05, %v609_v8  ;;  %v642_v22 = vadd.f32 1e-05, %v610_v16 }
 0x168   : > { %v518_v43 = vpop.xlane.xlu1 %517  ;;  %v539_v10 = vpop.xlane.xlu0 %538 }
 0x169   : > { %3806 = vrsqrt.f32 %v641_v13  ;;  %v608_v44 = vmul.f32 0.03125, %v518_v43  ;;  %v615_v52 = vmul.f32 0.03125, %v539_v10 }
 0x16a   : > { %3808 = vrsqrt.f32 %v642_v22 }
 0x16b   : > { %v640_v12 = vadd.f32 1e-05, %v608_v44  ;;  %v647_v4 = vadd.f32 1e-05, %v615_v52 }
 0x16c   : > { %v533_v30 = vpop.xlane.xlu1 %532  ;;  %v536_v39 = vpop.xlane.xlu0 %535 }
 0x16d   : > { %3810 = vrsqrt.f32 %v640_v12  ;;  %v613_v27 = vmul.f32 0.03125, %v533_v30  ;;  %v614_v63 = vmul.f32 0.03125, %v536_v39 }
 0x16e   : > { %v3801_v25 = vpop.eup %3800  ;;  %3812 = vrsqrt.f32 %v647_v4 }
 0x16f   : > { %v645_v46 = vadd.f32 1e-05, %v613_v27  ;;  %v646_v57 = vadd.f32 1e-05, %v614_v63  ;;  %v703_v42 = vmul.f32 %v3801_v25, %v4349_v55 }
 0x170   : > { %v530_v26 = vpop.xlane.xlu1 %529  ;;  %v551_v35 = vpop.xlane.xlu0 %550 }
 0x171   : > { %3814 = vrsqrt.f32 %v645_v46  ;;  %v612_v17 = vmul.f32 0.03125, %v530_v26  ;;  %v619_v0 = vmul.f32 0.03125, %v551_v35  ;;  %v741_v50 = vmul.f32 %v4580_v45, %v703_v42  ;;  %v4600_v46 = vld [vmem:[%s5318_s3] sm:$0xf] }
 0x172   : > { %v3803_v59 = vpop.eup %3802  ;;  %3816 = vrsqrt.f32 %v646_v57 }
 0x173   : > { %v3805_v60 = vpop.eup %3804  ;;  %v644_v23 = vadd.f32 1e-05, %v612_v17  ;;  %v651_v53 = vadd.f32 1e-05, %v619_v0  ;;  %v779_v62 = vadd.f32 %v4583_v36, %v741_v50  ;;  %v702_v47 = vmul.f32 %v3803_v59, %v4361_v29 }
 0x174   : > { %v707_v55 = vmul.f32 %v3805_v60, %v4353_v56  ;;  %v545_v8 = vpop.xlane.xlu1 %544  ;;  %v548_v16 = vpop.xlane.xlu0 %547 }
 0x175   : > { %3818 = vrsqrt.f32 %v644_v23  ;;  %v617_v13 = vmul.f32 0.03125, %v545_v8  ;;  %v618_v22 = vmul.f32 0.03125, %v548_v16  ;;  %3608 = vmatpush3.xpose.msk.msra.mxu0 %vm316_vm0, %v779_v62  ;;  %v740_v43 = vmul.f32 %v4580_v45, %v702_v47 }
 0x176   : > { %v3807_v10 = vpop.eup %3806  ;;  %3820 = vrsqrt.f32 %v651_v53  ;;  %3609 = vmatprep.subr.mxu0 %v4008_v9  ;;  %v745_v44 = vmul.f32 %v4580_v45, %v707_v55 }
 0x177   : > { %v3809_v52 = vpop.eup %3808  ;;  %v649_v12 = vadd.f32 1e-05, %v617_v13  ;;  %v650_v29 = vadd.f32 1e-05, %v618_v22  ;;  %v778_v56 = vadd.f32 %v4583_v36, %v740_v43  ;;  %v705_v4 = vmul.f32 %v3807_v10, %v4365_v3 }
 0x178   : > { %v706_v30 = vmul.f32 %v3809_v52, %v4375_v5  ;;  %v542_v39 = vpop.xlane.xlu1 %541  ;;  %v563_v27 = vpop.xlane.xlu0 %562  ;;  %v783_v3 = vadd.f32 %v4583_v36, %v745_v44 }
 0x179   : > { %3822 = vrsqrt.f32 %v649_v12  ;;  %v616_v63 = vmul.f32 0.03125, %v542_v39  ;;  %v623_v25 = vmul.f32 0.03125, %v563_v27  ;;  %3610 = vmatpush3.xpose.msk.msra.mxu0 %vm316_vm0, %v778_v56  ;;  %v743_v57 = vmul.f32 %v4580_v45, %v705_v4 }
 0x17a   : > { %v3811_v42 = vpop.eup %3810  ;;  %3824 = vrsqrt.f32 %v650_v29  ;;  %3621 = vmatprep.subr.mxu0 %v4008_v9  ;;  %v744_v5 = vmul.f32 %v4580_v45, %v706_v30 }
 0x17b   : > { %v3813_v26 = vpop.eup %3812  ;;  %v648_v35 = vadd.f32 1e-05, %v616_v63  ;;  %v655_v17 = vadd.f32 1e-05, %v623_v25  ;;  %v781_v0 = vadd.f32 %v4583_v36, %v743_v57  ;;  %v704_v50 = vmul.f32 %v3811_v42, %v4379_v6 }
 0x17c   : > { %v711_v59 = vmul.f32 %v3813_v26, %v4389_v2  ;;  %v557_v60 = vpop.xlane.xlu1 %556  ;;  %3612 = vmatmul.mubr.msk.f32.vlgmr.msra.gmra.mxu0 %vm316_vm0, %v4600_v46  ;;  %v560_v23 = vpop.xlane.xlu0 %559  ;;  %v782_v6 = vadd.f32 %v4583_v36, %v744_v5 }
 0x17d   : > { %3826 = vrsqrt.f32 %v648_v35  ;;  %v621_v53 = vmul.f32 0.03125, %v557_v60  ;;  %v622_v62 = vmul.f32 0.03125, %v560_v23  ;;  %3615 = vmatpush3.xpose.msk.msra.mxu1 %vm316_vm0, %v781_v0  ;;  %3622 = vmatpush3.xpose.msk.msra.mxu0 %vm316_vm0, %v783_v3  ;;  %v742_v47 = vmul.f32 %v4580_v45, %v704_v50 }
 0x17e   : > { %v3815_v55 = vpop.eup %3814  ;;  %3828 = vrsqrt.f32 %v655_v17  ;;  %3616 = vmatprep.subr.mxu1 %v4008_v9  ;;  %3623 = vmatprep.subr.mxu0 %v4008_v9  ;;  %v749_v2 = vmul.f32 %v4580_v45, %v711_v59 }
 0x17f   : > { %v3817_v8 = vpop.eup %3816  ;;  %v709_v16 = vmul.f32 %v3815_v55, %v4393_v11  ;;  %v653_v13 = vadd.f32 1e-05, %v621_v53  ;;  %v654_v22 = vadd.f32 1e-05, %v622_v62  ;;  %v780_v43 = vadd.f32 %v4583_v36, %v742_v47  ;;  %3625 = vmatprep.mubr.msk.f32.mxu0 %vm4009_vm1, %v4008_v9 }
 0x180   : > { %v710_v10 = vmul.f32 %v3817_v8, %v4403_v18  ;;  %v554_v44 = vpop.xlane.xlu1 %553  ;;  %v575_v52 = vpop.xlane.xlu0 %574  ;;  %v787_v4 = vadd.f32 %v4583_v36, %v749_v2 }
 0x181   : > { %3830 = vrsqrt.f32 %v653_v13  ;;  %v620_v12 = vmul.f32 0.03125, %v554_v44  ;;  %v627_v29 = vmul.f32 0.03125, %v575_v52  ;;  %3617 = vmatpush3.xpose.msk.msra.mxu1 %vm316_vm0, %v780_v43  ;;  %3624 = vmatpush3.xpose.msk.msra.mxu0 %vm316_vm0, %v782_v6  ;;  %v747_v11 = vmul.f32 %v4580_v45, %v709_v16 }
 0x182   : > { %v3819_v56 = vpop.eup %3818  ;;  %3832 = vrsqrt.f32 %v654_v22  ;;  %3628 = vmatprep.subr.mxu1 %v4008_v9  ;;  %3635 = vmatprep.subr.mxu0 %v4008_v9  ;;  %v748_v18 = vmul.f32 %v4580_v45, %v710_v10 }
 0x183   : > { %v3821_v30 = vpop.eup %3820  ;;  %v708_v39 = vmul.f32 %v3819_v56, %v4407_v49  ;;  %v652_v27 = vadd.f32 1e-05, %v620_v12  ;;  %v659_v63 = vadd.f32 1e-05, %v627_v29  ;;  %v785_v25 = vadd.f32 %v4583_v36, %v747_v11 }
 0x184   : > { %v715_v57 = vmul.f32 %v3821_v30, %v4417_v14  ;;  %3619 = vmatmul.mubr.msk.f32.vlgmr.msra.gmra.mxu1 %vm316_vm0, %v4600_v46  ;;  %v569_v42 = vpop.xlane.xlu1 %568  ;;  %3626 = vmatmul.mubr.msk.f32.vlgmr.msra.gmra.mxu0 %vm316_vm0, %v4600_v46  ;;  %v572_v3 = vpop.xlane.xlu0 %571  ;;  %v786_v14 = vadd.f32 %v4583_v36, %v748_v18 }
 0x185   : > { %3834 = vrsqrt.f32 %v652_v27  ;;  %v625_v5 = vmul.f32 0.03125, %v569_v42  ;;  %v626_v26 = vmul.f32 0.03125, %v572_v3  ;;  %3629 = vmatpush3.xpose.msk.msra.mxu1 %vm316_vm0, %v785_v25  ;;  %3636 = vmatpush3.xpose.msk.msra.mxu0 %vm316_vm0, %v787_v4  ;;  %v746_v49 = vmul.f32 %v4580_v45, %v708_v39 }
 0x186   : > { %v3823_v35 = vpop.eup %3822  ;;  %3836 = vrsqrt.f32 %v659_v63  ;;  %3630 = vmatprep.subr.mxu1 %v4008_v9  ;;  %3637 = vmatprep.subr.mxu0 %v4008_v9  ;;  %v753_v17 = vmul.f32 %v4580_v45, %v715_v57 }
 0x187   : > { %v3825_v0 = vpop.eup %3824  ;;  %v713_v50 = vmul.f32 %v3823_v35, %v4421_v21  ;;  %v657_v59 = vadd.f32 1e-05, %v625_v5  ;;  %v658_v60 = vadd.f32 1e-05, %v626_v26  ;;  %v784_v23 = vadd.f32 %v4583_v36, %v746_v49  ;;  %3632 = vmatprep.mubr.msk.f32.mxu1 %vm4009_vm1, %v4008_v9  ;;  %3639 = vmatprep.mubr.msk.f32.mxu0 %vm4009_vm1, %v4008_v9 }
 0x188   : > { %v714_v53 = vmul.f32 %v3825_v0, %v4431_v28  ;;  %v566_v62 = vpop.xlane.xlu1 %565  ;;  %v587_v47 = vpop.xlane.xlu0 %586  ;;  %v791_v8 = vadd.f32 %v4583_v36, %v753_v17 }
 0x189   : > { %3838 = vrsqrt.f32 %v657_v59  ;;  %v624_v55 = vmul.f32 0.03125, %v566_v62  ;;  %v631_v6 = vmul.f32 0.03125, %v587_v47  ;;  %3631 = vmatpush3.xpose.msk.msra.mxu1 %vm316_vm0, %v784_v23  ;;  %3638 = vmatpush3.xpose.msk.msra.mxu0 %vm316_vm0, %v786_v14  ;;  %v751_v21 = vmul.f32 %v4580_v45, %v713_v50 }
 0x18a   : > { %v3827_v2 = vpop.eup %3826  ;;  %3840 = vrsqrt.f32 %v658_v60  ;;  %3642 = vmatprep.subr.mxu1 %v4008_v9  ;;  %3649 = vmatprep.subr.mxu0 %v4008_v9  ;;  %v752_v28 = vmul.f32 %v4580_v45, %v714_v53 }
 0x18b   : > { %v3829_v16 = vpop.eup %3828  ;;  %v712_v13 = vmul.f32 %v3827_v2, %v4435_v40  ;;  %v656_v22 = vadd.f32 1e-05, %v624_v55  ;;  %v663_v43 = vadd.f32 1e-05, %v631_v6  ;;  %v789_v10 = vadd.f32 %v4583_v36, %v751_v21 }
 0x18c   : > { %v719_v44 = vmul.f32 %v3829_v16, %v4445_v24  ;;  %3633 = vmatmul.mubr.msk.f32.vlgmr.msra.gmra.mxu1 %vm316_vm0, %v4600_v46  ;;  %v581_v52 = vpop.xlane.xlu1 %580  ;;  %3640 = vmatmul.mubr.msk.f32.vlgmr.msra.gmra.mxu0 %vm316_vm0, %v4600_v46  ;;  %v584_v12 = vpop.xlane.xlu0 %583  ;;  %v790_v24 = vadd.f32 %v4583_v36, %v752_v28 }
 0x18d   : > { %3842 = vrsqrt.f32 %v656_v22  ;;  %v629_v29 = vmul.f32 0.03125, %v581_v52  ;;  %v630_v11 = vmul.f32 0.03125, %v584_v12  ;;  %3643 = vmatpush3.xpose.msk.msra.mxu1 %vm316_vm0, %v789_v10  ;;  %3650 = vmatpush3.xpose.msk.msra.mxu0 %vm316_vm0, %v791_v8  ;;  %v750_v40 = vmul.f32 %v4580_v45, %v712_v13 }
 0x18e   : > { %v3831_v56 = vpop.eup %3830  ;;  %3844 = vrsqrt.f32 %v663_v43  ;;  %3644 = vmatprep.subr.mxu1 %v4008_v9  ;;  %3651 = vmatprep.subr.mxu0 %v4008_v9  ;;  %v757_v4 = vmul.f32 %v4580_v45, %v719_v44 }
 0x18f   : > { %v3833_v18 = vpop.eup %3832  ;;  %v717_v30 = vmul.f32 %v3831_v56, %v4449_v31  ;;  %v661_v39 = vadd.f32 1e-05, %v629_v29  ;;  %v662_v27 = vadd.f32 1e-05, %v630_v11  ;;  %v788_v63 = vadd.f32 %v4583_v36, %v750_v40  ;;  %3646 = vmatprep.mubr.msk.f32.mxu1 %vm4009_vm1, %v4008_v9  ;;  %3653 = vmatprep.mubr.msk.f32.mxu0 %vm4009_vm1, %v4008_v9 }
 0x190   : > { %v718_v25 = vmul.f32 %v3833_v18, %v4459_v38  ;;  %v578_v57 = vpop.xlane.xlu1 %577  ;;  %v599_v42 = vpop.xlane.xlu0 %598  ;;  %v795_v49 = vadd.f32 %v4583_v36, %v757_v4 }
 0x191   : > { %3846 = vrsqrt.f32 %v661_v39  ;;  %v628_v3 = vmul.f32 0.03125, %v578_v57  ;;  %v635_v5 = vmul.f32 0.03125, %v599_v42  ;;  %3645 = vmatpush3.xpose.msk.msra.mxu1 %vm316_vm0, %v788_v63  ;;  %3652 = vmatpush3.xpose.msk.msra.mxu0 %vm316_vm0, %v790_v24  ;;  %v755_v31 = vmul.f32 %v4580_v45, %v717_v30 }
 0x192   : > { %v3835_v26 = vpop.eup %3834  ;;  %3848 = vrsqrt.f32 %v662_v27  ;;  %3656 = vmatprep.subr.mxu1 %v4008_v9  ;;  %3663 = vmatprep.subr.mxu0 %v4008_v9  ;;  %v756_v38 = vmul.f32 %v4580_v45, %v718_v25 }
 0x193   : > { %v3837_v35 = vpop.eup %3836  ;;  %v716_v14 = vmul.f32 %v3835_v26, %v4463_v1  ;;  %v660_v17 = vadd.f32 1e-05, %v628_v3  ;;  %v667_v0 = vadd.f32 1e-05, %v635_v5  ;;  %v793_v50 = vadd.f32 %v4583_v36, %v755_v31 }
 0x194   : > { %v723_v59 = vmul.f32 %v3837_v35, %v4473_v34  ;;  %3647 = vmatmul.mubr.msk.f32.vlgmr.msra.gmra.mxu1 %vm316_vm0, %v4600_v46  ;;  %v593_v60 = vpop.xlane.xlu1 %592  ;;  %3654 = vmatmul.mubr.msk.f32.vlgmr.msra.gmra.mxu0 %vm316_vm0, %v4600_v46  ;;  %v596_v23 = vpop.xlane.xlu0 %595  ;;  %v794_v34 = vadd.f32 %v4583_v36, %v756_v38 }
 0x195   : > { %3850 = vrsqrt.f32 %v660_v17  ;;  %v633_v53 = vmul.f32 0.03125, %v593_v60  ;;  %v634_v62 = vmul.f32 0.03125, %v596_v23  ;;  %3657 = vmatpush3.xpose.msk.msra.mxu1 %vm316_vm0, %v793_v50  ;;  %3664 = vmatpush3.xpose.msk.msra.mxu0 %vm316_vm0, %v795_v49  ;;  %v754_v1 = vmul.f32 %v4580_v45, %v716_v14 }
 0x196   : > { %v3839_v47 = vpop.eup %3838  ;;  %3852 = vrsqrt.f32 %v667_v0  ;;  %3658 = vmatprep.subr.mxu1 %v4008_v9  ;;  %3665 = vmatprep.subr.mxu0 %v4008_v9  ;;  %v761_v55 = vmul.f32 %v4580_v45, %v723_v59 }
 0x197   : > { %v3841_v6 = vpop.eup %3840  ;;  %v721_v21 = vmul.f32 %v3839_v47, %v4477_v41  ;;  %v665_v2 = vadd.f32 1e-05, %v633_v53  ;;  %v666_v8 = vadd.f32 1e-05, %v634_v62  ;;  %v792_v28 = vadd.f32 %v4583_v36, %v754_v1  ;;  %3660 = vmatprep.mubr.msk.f32.mxu1 %vm4009_vm1, %v4008_v9  ;;  %3667 = vmatprep.mubr.msk.f32.mxu0 %vm4009_vm1, %v4008_v9 }
 0x198   : > { %v722_v16 = vmul.f32 %v3841_v6, %v4487_v48  ;;  %v590_v13 = vpop.xlane.xlu1 %589  ;;  %v605_v22 = vpop.xlane.xlu0 %604  ;;  %v799_v52 = vadd.f32 %v4583_v36, %v761_v55 }
 0x199   : > { %3854 = vrsqrt.f32 %v665_v2  ;;  %v632_v43 = vmul.f32 0.03125, %v590_v13  ;;  %v637_v10 = vmul.f32 0.03125, %v605_v22  ;;  %3659 = vmatpush3.xpose.msk.msra.mxu1 %vm316_vm0, %v792_v28  ;;  %3666 = vmatpush3.xpose.msk.msra.mxu0 %vm316_vm0, %v794_v34  ;;  %v759_v41 = vmul.f32 %v4580_v45, %v721_v21 }
 0x19a   : > { %v3843_v44 = vpop.eup %3842  ;;  %3856 = vrsqrt.f32 %v666_v8  ;;  %3670 = vmatprep.subr.mxu1 %v4008_v9  ;;  %3677 = vmatprep.subr.mxu0 %v4008_v9  ;;  %v760_v48 = vmul.f32 %v4580_v45, %v722_v16  ;;  %v895_v28 = vlaneseq  ;;  %v4011_v22 = vmov 286326784  }
 0x19b   : > { %v3845_v12 = vpop.eup %3844  ;;  %v720_v29 = vmul.f32 %v3843_v44, %v4491_v32  ;;  %v664_v11 = vadd.f32 1e-05, %v632_v43  ;;  %v669_v40 = vadd.f32 1e-05, %v637_v10  ;;  %v797_v56 = vadd.f32 %v4583_v36, %v759_v41 }
 0x19c   : > { %v727_v24 = vmul.f32 %v3845_v12, %v4503_v19  ;;  %3661 = vmatmul.mubr.msk.f32.vlgmr.msra.gmra.mxu1 %vm316_vm0, %v4600_v46  ;;  %v602_v4 = vpop.xlane.xlu1 %601  ;;  %3668 = vmatmul.mubr.msk.f32.vlgmr.msra.gmra.mxu0 %vm316_vm0, %v4600_v46  ;;  %v798_v19 = vadd.f32 %v4583_v36, %v760_v48  ;;  %v896_v13 = vshrl.u32 %v895_v28, 7  ;;  %v923_v43 = vunpack.c.l.s4 %v4011_v22 }
 0x19d   : > { %3858 = vrsqrt.f32 %v664_v11  ;;  %v636_v18 = vmul.f32 0.03125, %v602_v4  ;;  %3671 = vmatpush3.xpose.msk.msra.mxu1 %vm316_vm0, %v797_v56  ;;  %3678 = vmatpush3.xpose.msk.msra.mxu0 %vm316_vm0, %v799_v52  ;;  %v758_v32 = vmul.f32 %v4580_v45, %v720_v29  ;;  %v957_v4 = vld [vmem:[%s4820_s7] sm:$0x1] }
 0x19e   : > { %v3847_v30 = vpop.eup %3846  ;;  %3860 = vrsqrt.f32 %v669_v40  ;;  %3672 = vmatprep.subr.mxu1 %v4008_v9  ;;  %3679 = vmatprep.subr.mxu0 %v4008_v9  ;;  %v765_v57 = vmul.f32 %v4580_v45, %v727_v24  ;;  %v924_v44 = vunpack.c.0.s8 %v923_v43 }
 0x19f   : > { %v3849_v39 = vpop.eup %3848  ;;  %v725_v27 = vmul.f32 %v3847_v30, %v4507_v37  ;;  %v668_v63 = vadd.f32 1e-05, %v636_v18  ;;  %v796_v25 = vadd.f32 %v4583_v36, %v758_v32  ;;  %3674 = vmatprep.mubr.msk.f32.mxu1 %vm4009_vm1, %v4008_v9  ;;  %3681 = vmatprep.mubr.msk.f32.mxu0 %vm4009_vm1, %v4008_v9 }
 0x1a0   : > { %v726_v42 = vmul.f32 %v3849_v39, %v4521_v58  ;;  %v803_v58 = vadd.f32 %v4583_v36, %v765_v57  ;;  %v4811_v12 = vsub.s32 %v924_v44, %v896_v13 }
 0x1a1   : > { %3862 = vrsqrt.f32 %v668_v63  ;;  %3673 = vmatpush3.xpose.msk.msra.mxu1 %vm316_vm0, %v796_v25  ;;  %3680 = vmatpush3.xpose.msk.msra.mxu0 %vm316_vm0, %v798_v19  ;;  %v763_v37 = vmul.f32 %v4580_v45, %v725_v27  ;;  %v960_v63 = vld [vmem:[%s4820_s7 + $0x8] sm:$0x1]  ;;  %v963_v25 = vld [vmem:[%s4820_s7 + $0x10] sm:$0x1] }
 0x1a2   : > { %v3851_v3 = vpop.eup %3850  ;;  %3684 = vmatprep.subr.mxu1 %v4008_v9  ;;  %3691 = vmatprep.subr.mxu0 %v4008_v9  ;;  %v764_v5 = vmul.f32 %v4580_v45, %v726_v42 }
 0x1a3   : > { %v3853_v31 = vpop.eup %3852  ;;  %v724_v26 = vmul.f32 %v3851_v3, %v4525_v33  ;;  %v801_v49 = vadd.f32 %v4583_v36, %v763_v37 }
 0x1a4   : > { %v731_v38 = vmul.f32 %v3853_v31, %v4535_v54  ;;  %3675 = vmatmul.mubr.msk.f32.vlgmr.msra.gmra.mxu1 %vm316_vm0, %v4600_v46  ;;  %3682 = vmatmul.mubr.msk.f32.vlgmr.msra.gmra.mxu0 %vm316_vm0, %v4600_v46  ;;  %v802_v33 = vadd.f32 %v4583_v36, %v764_v5 }
 0x1a5   : > { %3685 = vmatpush3.xpose.msk.msra.mxu1 %vm316_vm0, %v801_v49  ;;  %3692 = vmatpush3.xpose.msk.msra.mxu0 %vm316_vm0, %v803_v58  ;;  %v762_v35 = vmul.f32 %v4580_v45, %v724_v26  ;;  %v966_v58 = vld [vmem:[%s4820_s7 + $0x18] sm:$0x1] }
 0x1a6   : > { %v3855_v14 = vpop.eup %3854  ;;  %3686 = vmatprep.subr.mxu1 %v4008_v9  ;;  %3693 = vmatprep.subr.mxu0 %v4008_v9  ;;  %v769_v50 = vmul.f32 %v4580_v45, %v731_v38 }
 0x1a7   : > { %v3857_v54 = vpop.eup %3856  ;;  %v729_v17 = vmul.f32 %v3855_v14, %v4539_v61  ;;  %v800_v0 = vadd.f32 %v4583_v36, %v762_v35  ;;  %3688 = vmatprep.mubr.msk.f32.mxu1 %vm4009_vm1, %v4008_v9  ;;  %3695 = vmatprep.mubr.msk.f32.mxu0 %vm4009_vm1, %v4008_v9 }
 0x1a8   : > { %v730_v59 = vmul.f32 %v3857_v54, %v4549_v15  ;;  %v807_v1 = vadd.f32 %v4583_v36, %v769_v50 }
 0x1a9   : > { %3687 = vmatpush3.xpose.msk.msra.mxu1 %vm316_vm0, %v800_v0  ;;  %3694 = vmatpush3.xpose.msk.msra.mxu0 %vm316_vm0, %v802_v33  ;;  %v767_v60 = vmul.f32 %v4580_v45, %v729_v17 }
 0x1aa   : > { %v3859_v23 = vpop.eup %3858  ;;  %3698 = vmatprep.subr.mxu1 %v4008_v9  ;;  %3705 = vmatprep.subr.mxu0 %v4008_v9  ;;  %v768_v15 = vmul.f32 %v4580_v45, %v730_v59 }
 0x1ab   : > { %v3861_v61 = vpop.eup %3860  ;;  %v728_v53 = vmul.f32 %v3859_v23, %v4553_v51  ;;  %v805_v62 = vadd.f32 %v4583_v36, %v767_v60 }
 0x1ac   : > { %v733_v47 = vmul.f32 %v3861_v61, %v4563_v7  ;;  %3689 = vmatmul.mubr.msk.f32.vlgmr.msra.gmra.mxu1 %vm316_vm0, %v4600_v46  ;;  %3696 = vmatmul.mubr.msk.f32.vlgmr.msra.gmra.mxu0 %vm316_vm0, %v4600_v46  ;;  %v806_v21 = vadd.f32 %v4583_v36, %v768_v15 }
 0x1ad   : > { %3699 = vmatpush3.xpose.msk.msra.mxu1 %vm316_vm0, %v805_v62  ;;  %3706 = vmatpush3.xpose.msk.msra.mxu0 %vm316_vm0, %v807_v1  ;;  %v766_v51 = vmul.f32 %v4580_v45, %v728_v53 }
 0x1ae   : > { %v3863_v34 = vpop.eup %3862  ;;  %3700 = vmatprep.subr.mxu1 %v4008_v9  ;;  %3707 = vmatprep.subr.mxu0 %v4008_v9  ;;  %v771_v55 = vmul.f32 %v4580_v45, %v733_v47 }
 0x1af   : > { %v732_v7 = vmul.f32 %v3863_v34, %v4567_v20  ;;  %v804_v6 = vadd.f32 %v4583_v36, %v766_v51  ;;  %3702 = vmatprep.mubr.msk.f32.mxu1 %vm4009_vm1, %v4008_v9  ;;  %3709 = vmatprep.mubr.msk.f32.mxu0 %vm4009_vm1, %v4008_v9 }
 0x1b0   : > { %v809_v2 = vadd.f32 %v4583_v36, %v771_v55 }
 0x1b1   : > { %3701 = vmatpush3.xpose.msk.msra.mxu1 %vm316_vm0, %v804_v6  ;;  %3708 = vmatpush3.xpose.msk.msra.mxu0 %vm316_vm0, %v806_v21  ;;  %v770_v8 = vmul.f32 %v4580_v45, %v732_v7  ;;  %v4010_v45 = vmov 1966171168  }
 0x1b2   : > { %3712 = vmatprep.subr.mxu1 %v4008_v9 }
 0x1b3   : > { %v808_v20 = vadd.f32 %v4583_v36, %v770_v8  ;;  %v893_v36 = vunpack.c.l.s4 %v4010_v45  ;;  %v1266_v45 = vld [vmem:[%s4820_s7] sm:$0x2] }
 0x1b4   : > { %3703 = vmatmul.mubr.msk.f32.vlgmr.msra.gmra.mxu1 %vm316_vm0, %v4600_v46  ;;  %3710 = vmatmul.mubr.msk.f32.vlgmr.msra.gmra.mxu0 %vm316_vm0, %v4600_v46 }
 0x1b5   : > { %3713 = vmatpush3.xpose.msk.msra.mxu1 %vm316_vm0, %v809_v2  ;;  %3716 = vmatprep.mubr.msk.f32.mxu1 %vm4009_vm1, %v4008_v9  ;;  %v894_v16 = vunpack.c.0.s8 %v893_v36  ;;  %vm1882_vm1 = vsmask.f32 3328 }
 0x1b6   : > { %3714 = vmatprep.subr.mxu1 %v4008_v9 }
 0x1b7   : > { %v4807_v10 = vsub.s32 %v894_v16, %v896_v13 }
 0x1b9   : > { %3715 = vmatpush3.xpose.msk.msra.mxu1 %vm316_vm0, %v808_v20 }
 0x1bc   : > { %3717 = vmatmul.mubr.msk.f32.vlgmr.msra.gmra.mxu1 %vm316_vm0, %v4600_v46  ;;  %vm1881_vm0 = vcmask 125955  }
 0x1bd   : > { %vm4988_vm3 = vmand %vm1881_vm0, %vm1882_vm1 }
 0x1be   : > { %vm5041_vm6 = vmand %vm1881_vm0, %vm2036_vm5 }
 0x23c   : > { %v886_v41 = vpop.f32.mrf.mxu0 }
 0x23d   : > { %v890_v52 = vpack.c.bf16 %v886_v41, %v886_v41 }
 0x23e   : > { %v3613_v48 = vpop.f32.mrf.mxu0 }
 0x23f   : > { %v898_v9 = vrot.slane %v890_v52, %v4807_v10 }
 0x241   : > { %v899_v29 = vcombine.high %v898_v9, %v898_v9  ;;  %v906_v46 = vrot.slane %v898_v9, %v4807_v10 }
 0x243   : > { %v913_v11 = vrot.slane %v899_v29, %v4807_v10  ;;  %v915_v40 = vunpack.i.h.s16 %v906_v46  ;;  %v3396_v56 = vpack.i.b16 %v906_v46, %v906_v46  ;;  %v1269_v29 = vld [vmem:[%s4820_s7 + $0x8] sm:$0x2]  ;;  %v1272_v46 = vld [vmem:[%s4820_s7 + $0x10] sm:$0x2] }
 0x244   : > { %v1041_v18 = vpop.f32.mrf.mxu1  ;;  %v1195_v32 = vpop.f32.mrf.mxu0 }
 0x245   : > { %v917_v30 = vunpack.i.h.s16 %v913_v11  ;;  %v919_v19 = vpack.i.b16 %v915_v40, %v915_v40  ;;  %v3397_v39 = vpack.i.b16 %v913_v11, %v913_v11  ;;  %v928_v27 = vrot.slane %v3396_v56, %v4811_v12 }
 0x246   : > { %v1045_v57 = vpack.c.bf16 %v1041_v18, %v1041_v18  ;;  %v1199_v42 = vpack.c.bf16 %v1195_v32, %v1195_v32  ;;  %v3620_v37 = vpop.f32.mrf.mxu1  ;;  %v3627_v3 = vpop.f32.mrf.mxu0 }
 0x247   : > { %v921_v5 = vpack.i.b16 %v917_v30, %v917_v30  ;;  %v935_v31 = vrot.slane %v919_v19, %v4811_v12  ;;  %v942_v26 = vrot.slane %v3397_v39, %v4811_v12  ;;  %v958_v49 = vsel %vm4816_vm4, %v928_v27, %v957_v4  ;;  %v1275_v27 = vld [vmem:[%s4820_s7 + $0x18] sm:$0x2] }
 0x248   : > { %959 = vst [vmem:[%s4820_s7] sm:$0x1] %v958_v49  ;;  %v1053_v38 = vrot.slane %v1045_v57, %v4807_v10  ;;  %v1207_v35 = vrot.slane %v1199_v42, %v4807_v10 }
 0x249   : > { %v949_v14 = vrot.slane %v921_v5, %v4811_v12  ;;  %v961_v33 = vsel %vm4816_vm4, %v935_v31, %v960_v63  ;;  %v964_v54 = vsel %vm4816_vm4, %v942_v26, %v963_v25 }
 0x24a   : > { %962 = vst [vmem:[%s4820_s7 + $0x8] sm:$0x1] %v961_v33  ;;  %965 = vst [vmem:[%s4820_s7 + $0x10] sm:$0x1] %v964_v54  ;;  %v1054_v17 = vcombine.high %v1053_v38, %v1053_v38  ;;  %v1061_v0 = vrot.slane %v1053_v38, %v4807_v10  ;;  %v1208_v50 = vcombine.high %v1207_v35, %v1207_v35 }
 0x24b   : > { %v1215_v59 = vrot.slane %v1207_v35, %v4807_v10  ;;  %v967_v60 = vsel %vm4816_vm4, %v949_v14, %v966_v58 }
 0x24c   : > { %968 = vst [vmem:[%s4820_s7 + $0x18] sm:$0x1] %v967_v60  ;;  %v1068_v23 = vrot.slane %v1054_v17, %v4807_v10  ;;  %v1070_v61 = vunpack.i.h.s16 %v1061_v0  ;;  %v3401_v53 = vpack.i.b16 %v1061_v0, %v1061_v0  ;;  %v1222_v62 = vrot.slane %v1208_v50, %v4807_v10  ;;  %v1350_v1 = vpop.f32.mrf.mxu1  ;;  %v1504_v15 = vpop.f32.mrf.mxu0 }
 0x24d   : > { %v1224_v51 = vunpack.i.h.s16 %v1215_v59  ;;  %v3406_v34 = vpack.i.b16 %v1215_v59, %v1215_v59  ;;  %v1354_v55 = vpack.c.bf16 %v1350_v1, %v1350_v1  ;;  %v1508_v7 = vpack.c.bf16 %v1504_v15, %v1504_v15 }
 0x24e   : > { %v1072_v6 = vunpack.i.h.s16 %v1068_v23  ;;  %v1074_v21 = vpack.i.b16 %v1070_v61, %v1070_v61  ;;  %v3402_v2 = vpack.i.b16 %v1068_v23, %v1068_v23  ;;  %v1083_v8 = vrot.slane %v3401_v53, %v4811_v12  ;;  %v3634_v36 = vpop.f32.mrf.mxu1  ;;  %v3641_v28 = vpop.f32.mrf.mxu0 }
 0x24f   : > { %v1111_v16 = vld [vmem:[%s4820_s7] sm:$0x1]  ;;  %v1226_v13 = vunpack.i.h.s16 %v1222_v62  ;;  %v1228_v22 = vpack.i.b16 %v1224_v51, %v1224_v51  ;;  %v3407_v43 = vpack.i.b16 %v1222_v62, %v1222_v62  ;;  %v1237_v41 = vrot.slane %v3406_v34, %v4811_v12 }
 0x250   : > { %v1076_v44 = vpack.i.b16 %v1072_v6, %v1072_v6  ;;  %v1090_v52 = vrot.slane %v1074_v21, %v4811_v12  ;;  %v1097_v48 = vrot.slane %v3402_v2, %v4811_v12  ;;  %v1112_v9 = vsel %vm4850_vm9, %v1083_v8, %v1111_v16  ;;  %v1575_v6 = vld [vmem:[%s4820_s7] sm:$0x4] }
 0x251   : > { %1113 = vst [vmem:[%s4820_s7] sm:$0x1] %v1112_v9  ;;  %v1114_v11 = vld [vmem:[%s4820_s7 + $0x8] sm:$0x1]  ;;  %v1117_v40 = vld [vmem:[%s4820_s7 + $0x10] sm:$0x1]  ;;  %v1230_v56 = vpack.i.b16 %v1226_v13, %v1226_v13  ;;  %v1244_v4 = vrot.slane %v1228_v22, %v4811_v12  ;;  %v1251_v18 = vrot.slane %v3407_v43, %v4811_v12  ;;  %v1267_v32 = vsel %vm4857_vm11, %v1237_v41, %v1266_v45 }
 0x252   : > { %v1104_v30 = vrot.slane %v1076_v44, %v4811_v12  ;;  %v1115_v19 = vsel %vm4850_vm9, %v1090_v52, %v1114_v11  ;;  %v1118_v39 = vsel %vm4850_vm9, %v1097_v48, %v1117_v40  ;;  %1268 = vst [vmem:[%s4820_s7] sm:$0x2] %v1267_v32  ;;  %v1362_v63 = vrot.slane %v1354_v55, %v4807_v10  ;;  %v1578_v43 = vld [vmem:[%s4820_s7 + $0x8] sm:$0x4]  ;;  %v1581_v41 = vld [vmem:[%s4820_s7 + $0x10] sm:$0x4] }
 0x253   : > { %1116 = vst [vmem:[%s4820_s7 + $0x8] sm:$0x1] %v1115_v19  ;;  %1119 = vst [vmem:[%s4820_s7 + $0x10] sm:$0x1] %v1118_v39  ;;  %v1120_v25 = vld [vmem:[%s4820_s7 + $0x18] sm:$0x1]  ;;  %v1258_v57 = vrot.slane %v1230_v56, %v4811_v12  ;;  %v1270_v42 = vsel %vm4857_vm11, %v1244_v4, %v1269_v29  ;;  %v1273_v37 = vsel %vm4857_vm11, %v1251_v18, %v1272_v46 }
 0x254   : > { %v1516_v3 = vrot.slane %v1508_v7, %v4807_v10  ;;  %v1121_v5 = vsel %vm4850_vm9, %v1104_v30, %v1120_v25  ;;  %1271 = vst [vmem:[%s4820_s7 + $0x8] sm:$0x2] %v1270_v42  ;;  %1274 = vst [vmem:[%s4820_s7 + $0x10] sm:$0x2] %v1273_v37  ;;  %v1363_v31 = vcombine.high %v1362_v63, %v1362_v63  ;;  %v1659_v49 = vpop.f32.mrf.mxu1  ;;  %v4899_v58 = vpop.f32.mrf.mxu0  ;;  %v1584_v4 = vld [vmem:[%s4820_s7 + $0x18] sm:$0x4] }
 0x255   : > { %v1370_v26 = vrot.slane %v1362_v63, %v4807_v10  ;;  %1122 = vst [vmem:[%s4820_s7 + $0x18] sm:$0x1] %v1121_v5  ;;  %v1276_v38 = vsel %vm4857_vm11, %v1258_v57, %v1275_v27  ;;  %v1663_v33 = vpack.c.bf16 %v1659_v49, %v1659_v49  ;;  %v1817_v50 = vpack.c.bf16 %v4899_v58, %v4899_v58 }
 0x256   : > { %v1517_v35 = vcombine.high %v1516_v3, %v1516_v3  ;;  %v1524_v14 = vrot.slane %v1516_v3, %v4807_v10  ;;  %1277 = vst [vmem:[%s4820_s7 + $0x18] sm:$0x2] %v1276_v38  ;;  %v1377_v54 = vrot.slane %v1363_v31, %v4807_v10  ;;  %v3648_v59 = vpop.f32.mrf.mxu1  ;;  %v3655_v60 = vpop.f32.mrf.mxu0 }
 0x257   : > { %v1379_v17 = vunpack.i.h.s16 %v1370_v26  ;;  %v3411_v0 = vpack.i.b16 %v1370_v26, %v1370_v26  ;;  %v1671_v1 = vrot.slane %v1663_v33, %v4807_v10  ;;  %v1825_v37 = vrot.slane %v1817_v50, %v4807_v10 }
 0x258   : > { %v1531_v61 = vrot.slane %v1517_v35, %v4807_v10  ;;  %v1533_v53 = vunpack.i.h.s16 %v1524_v14  ;;  %v3416_v62 = vpack.i.b16 %v1524_v14, %v1524_v14  ;;  %v1381_v15 = vunpack.i.h.s16 %v1377_v54 }
 0x259   : > { %v1383_v51 = vpack.i.b16 %v1379_v17, %v1379_v17  ;;  %v3412_v34 = vpack.i.b16 %v1377_v54, %v1377_v54  ;;  %v1392_v55 = vrot.slane %v3411_v0, %v4811_v12  ;;  %v1420_v21 = vld [vmem:[%s4820_s7] sm:$0x2]  ;;  %v1672_v18 = vcombine.high %v1671_v1, %v1671_v1 }
 0x25a   : > { %v1535_v2 = vunpack.i.h.s16 %v1531_v61  ;;  %v1537_v8 = vpack.i.b16 %v1533_v53, %v1533_v53  ;;  %v3417_v45 = vpack.i.b16 %v1531_v61, %v1531_v61  ;;  %v1546_v36 = vrot.slane %v3416_v62, %v4811_v12 }
 0x25b   : > { %v1385_v28 = vpack.i.b16 %v1381_v15, %v1381_v15  ;;  %v1399_v16 = vrot.slane %v1383_v51, %v4811_v12  ;;  %v1406_v13 = vrot.slane %v3412_v34, %v4811_v12  ;;  %v1421_v22 = vsel %vm4911_vm14, %v1392_v55, %v1420_v21  ;;  %v1423_v44 = vld [vmem:[%s4820_s7 + $0x8] sm:$0x2]  ;;  %v1426_v52 = vld [vmem:[%s4820_s7 + $0x10] sm:$0x2] }
 0x25c   : > { %1422 = vst [vmem:[%s4820_s7] sm:$0x2] %v1421_v22  ;;  %v1539_v48 = vpack.i.b16 %v1535_v2, %v1535_v2  ;;  %v1553_v9 = vrot.slane %v1537_v8, %v4811_v12  ;;  %v1560_v29 = vrot.slane %v3417_v45, %v4811_v12  ;;  %v1576_v46 = vsel %vm4920_vm15, %v1546_v36, %v1575_v6  ;;  %v1968_v32 = vpop.f32.mrf.mxu1  ;;  %v2122_v30 = vpop.f32.mrf.mxu0 }
 0x25d   : > { %v1413_v11 = vrot.slane %v1385_v28, %v4811_v12  ;;  %v1424_v40 = vsel %vm4911_vm14, %v1399_v16, %v1423_v44  ;;  %v1427_v56 = vsel %vm4911_vm14, %v1406_v13, %v1426_v52  ;;  %1577 = vst [vmem:[%s4820_s7] sm:$0x4] %v1576_v46  ;;  %v1429_v19 = vld [vmem:[%s4820_s7 + $0x18] sm:$0x2]  ;;  %v1679_v25 = vrot.slane %v1671_v1, %v4807_v10  ;;  %v1884_v28 = vld [vmem:[%s4820_s7] sm:$0x8] }
 0x25e   : > { %1425 = vst [vmem:[%s4820_s7 + $0x8] sm:$0x2] %v1424_v40  ;;  %1428 = vst [vmem:[%s4820_s7 + $0x10] sm:$0x2] %v1427_v56  ;;  %v1567_v39 = vrot.slane %v1539_v48, %v4811_v12  ;;  %v1579_v27 = vsel %vm4920_vm15, %v1553_v9, %v1578_v43  ;;  %v1582_v63 = vsel %vm4920_vm15, %v1560_v29, %v1581_v41  ;;  %v3662_v5 = vpop.f32.mrf.mxu1  ;;  %v3669_v31 = vpop.f32.mrf.mxu0  ;;  %v1887_v52 = vld [vmem:[%s4820_s7 + $0x8] sm:$0x8] }
 0x25f   : > { %v1430_v57 = vsel %vm4911_vm14, %v1413_v11, %v1429_v19  ;;  %1580 = vst [vmem:[%s4820_s7 + $0x8] sm:$0x4] %v1579_v27  ;;  %1583 = vst [vmem:[%s4820_s7 + $0x10] sm:$0x4] %v1582_v63  ;;  %v1686_v42 = vrot.slane %v1672_v18, %v4807_v10  ;;  %v1972_v3 = vpack.c.bf16 %v1968_v32, %v1968_v32  ;;  %v1688_v49 = vunpack.i.h.s16 %v1679_v25  ;;  %v1890_v56 = vld [vmem:[%s4820_s7 + $0x10] sm:$0x8] }
 0x260   : > { %1431 = vst [vmem:[%s4820_s7 + $0x18] sm:$0x2] %v1430_v57  ;;  %v1585_v26 = vsel %vm4920_vm15, %v1567_v39, %v1584_v4  ;;  %v3421_v58 = vpack.i.b16 %v1679_v25, %v1679_v25  ;;  %v2126_v38 = vpack.c.bf16 %v2122_v30, %v2122_v30  ;;  %v1826_v33 = vcombine.high %v1825_v37, %v1825_v37  ;;  %v1893_v39 = vld [vmem:[%s4820_s7 + $0x18] sm:$0x8] }
 0x261   : > { %1586 = vst [vmem:[%s4820_s7 + $0x18] sm:$0x4] %v1585_v26  ;;  %v1690_v35 = vunpack.i.h.s16 %v1686_v42  ;;  %v3422_v14 = vpack.i.b16 %v1686_v42, %v1686_v42  ;;  %v1833_v54 = vrot.slane %v1825_v37, %v4807_v10  ;;  %v1692_v17 = vpack.i.b16 %v1688_v49, %v1688_v49 }
 0x262   : > { %v1701_v0 = vrot.slane %v3421_v58, %v4811_v12  ;;  %v1980_v59 = vrot.slane %v1972_v3, %v4807_v10  ;;  %v4976_v60 = vrot.slane %v2126_v38, %v4807_v10  ;;  %v1840_v62 = vrot.slane %v1826_v33, %v4807_v10 }
 0x263   : > { %v1694_v61 = vpack.i.b16 %v1690_v35, %v1690_v35  ;;  %v1715_v53 = vrot.slane %v3422_v14, %v4811_v12  ;;  %v1842_v1 = vunpack.i.h.s16 %v1833_v54  ;;  %v1708_v15 = vrot.slane %v1692_v17, %v4811_v12 }
 0x264   : > { %v1729_v51 = vld [vmem:[%s4820_s7] sm:$0x4]  ;;  %v3426_v34 = vpack.i.b16 %v1833_v54, %v1833_v54  ;;  %v1981_v55 = vcombine.high %v1980_v59, %v1980_v59  ;;  %v1988_v6 = vrot.slane %v1980_v59, %v4807_v10  ;;  %v1844_v8 = vunpack.i.h.s16 %v1840_v62  ;;  %v2274_v16 = vpop.f32.mrf.mxu1  ;;  %v2426_v13 = vpop.f32.mrf.mxu0 }
 0x265   : > { %v1722_v21 = vrot.slane %v1694_v61, %v4811_v12  ;;  %v1730_v2 = vsel %vm4970_vm2, %v1701_v0, %v1729_v51  ;;  %v1846_v45 = vpack.i.b16 %v1842_v1, %v1842_v1  ;;  %v3427_v41 = vpack.i.b16 %v1840_v62, %v1840_v62 }
 0x266   : > { %1731 = vst [vmem:[%s4820_s7] sm:$0x4] %v1730_v2  ;;  %v1732_v22 = vld [vmem:[%s4820_s7 + $0x8] sm:$0x4]  ;;  %v1735_v43 = vld [vmem:[%s4820_s7 + $0x10] sm:$0x4]  ;;  %v1855_v44 = vrot.slane %v3426_v34, %v4811_v12  ;;  %v1995_v48 = vrot.slane %v1981_v55, %v4807_v10  ;;  %v1997_v9 = vunpack.i.h.s16 %v1988_v6  ;;  %v1848_v11 = vpack.i.b16 %v1844_v8, %v1844_v8  ;;  %v3676_v4 = vpop.f32.mrf.mxu1  ;;  %v3683_v18 = vpop.f32.mrf.mxu0 }
 0x267   : > { %v1733_v29 = vsel %vm4970_vm2, %v1708_v15, %v1732_v22  ;;  %v1736_v46 = vsel %vm4970_vm2, %v1715_v53, %v1735_v43  ;;  %v1862_v40 = vrot.slane %v1846_v45, %v4811_v12  ;;  %v1869_v30 = vrot.slane %v3427_v41, %v4811_v12  ;;  %v2190_v8 = vld [vmem:[%s4820_s7 + $0x4] sm:$0x1]  ;;  %v2196_v22 = vld [vmem:[%s4820_s7 + $0x14] sm:$0x1]  ;;  %v2199_v18 = vld [vmem:[%s4820_s7 + $0x1c] sm:$0x1] }
 0x268   : > { %1734 = vst [vmem:[%s4820_s7 + $0x8] sm:$0x4] %v1733_v29  ;;  %1737 = vst [vmem:[%s4820_s7 + $0x10] sm:$0x4] %v1736_v46  ;;  %v1738_v32 = vld [vmem:[%s4820_s7 + $0x18] sm:$0x4]  ;;  %v1885_v19 = vsel %vm4988_vm3, %v1855_v44, %v1884_v28  ;;  %v1999_v27 = vunpack.i.h.s16 %v1995_v48  ;;  %v3431_v63 = vpack.i.b16 %v1988_v6, %v1988_v6  ;;  %v1876_v57 = vrot.slane %v1848_v11, %v4811_v12 }
 0x269   : > { %v1739_v25 = vsel %vm4970_vm2, %v1722_v21, %v1738_v32  ;;  %1886 = vst [vmem:[%s4820_s7] sm:$0x8] %v1885_v19  ;;  %v1888_v42 = vsel %vm4988_vm3, %v1862_v40, %v1887_v52  ;;  %v2001_v37 = vpack.i.b16 %v1997_v9, %v1997_v9  ;;  %v1891_v3 = vsel %vm4988_vm3, %v1869_v30, %v1890_v56 }
 0x26a   : > { %1740 = vst [vmem:[%s4820_s7 + $0x18] sm:$0x4] %v1739_v25  ;;  %1889 = vst [vmem:[%s4820_s7 + $0x8] sm:$0x8] %v1888_v42  ;;  %v3432_v5 = vpack.i.b16 %v1995_v48, %v1995_v48  ;;  %v2003_v31 = vpack.i.b16 %v1999_v27, %v1999_v27  ;;  %v1894_v26 = vsel %vm4988_vm3, %v1876_v57, %v1893_v39 }
 0x26b   : > { %1892 = vst [vmem:[%s4820_s7 + $0x10] sm:$0x8] %v1891_v3  ;;  %v2010_v49 = vrot.slane %v3431_v63, %v4811_v12  ;;  %v2135_v58 = vcombine.high %v4976_v60, %v4976_v60  ;;  %v2142_v38 = vrot.slane %v4976_v60, %v4807_v10  ;;  %1895 = vst [vmem:[%s4820_s7 + $0x18] sm:$0x8] %v1894_v26 }
 0x26c   : > { %v2017_v35 = vrot.slane %v2001_v37, %v4811_v12  ;;  %v2024_v14 = vrot.slane %v3432_v5, %v4811_v12  ;;  %v2278_v33 = vpack.c.bf16 %v2274_v16, %v2274_v16  ;;  %v2430_v54 = vpack.c.bf16 %v2426_v13, %v2426_v13  ;;  %v5035_v53 = vpop.f32.mrf.mxu1  ;;  %v5037_v60 = vpop.f32.mrf.mxu0  ;;  %v2193_v13 = vld [vmem:[%s4820_s7 + $0xc] sm:$0x1] }
 0x26d   : > { %v2031_v17 = vrot.slane %v2003_v31, %v4811_v12  ;;  %v2149_v0 = vrot.slane %v2135_v58, %v4807_v10  ;;  %v2151_v59 = vunpack.i.h.s16 %v2142_v38  ;;  %v3436_v61 = vpack.i.b16 %v2142_v38, %v2142_v38 }
 0x26e   : > { %v2286_v1 = vrot.slane %v2278_v33, %v4807_v10  ;;  %v2438_v15 = vrot.slane %v2430_v54, %v4807_v10  ;;  %v2582_v51 = vpack.c.bf16 %v5035_v53, %v5035_v53  ;;  %v2734_v34 = vpack.c.bf16 %v5037_v60, %v5037_v60  ;;  %v3690_v45 = vpop.f32.mrf.mxu1  ;;  %v3697_v28 = vpop.f32.mrf.mxu0 }
 0x26f   : > { %v2153_v55 = vunpack.i.h.s16 %v2149_v0  ;;  %v2155_v6 = vpack.i.b16 %v2151_v59, %v2151_v59  ;;  %v3437_v21 = vpack.i.b16 %v2149_v0, %v2149_v0  ;;  %v2164_v2 = vrot.slane %v3436_v61, %v4811_v12  ;;  %v2494_v61 = vld [vmem:[%s4820_s7 + $0x4] sm:$0x2] }
 0x270   : > { %v2038_v16 = vld [vmem:[%s4820_s7] sm:$0x8]  ;;  %v2287_v43 = vcombine.high %v2286_v1, %v2286_v1  ;;  %v2294_v41 = vrot.slane %v2286_v1, %v4807_v10  ;;  %v2439_v44 = vcombine.high %v2438_v15, %v2438_v15  ;;  %v2446_v52 = vrot.slane %v2438_v15, %v4807_v10 }
 0x271   : > { %v2039_v48 = vsel %vm5041_vm6, %v2010_v49, %v2038_v16  ;;  %v2041_v9 = vld [vmem:[%s4820_s7 + $0x8] sm:$0x8]  ;;  %v2157_v29 = vpack.i.b16 %v2153_v55, %v2153_v55  ;;  %v2171_v46 = vrot.slane %v2155_v6, %v4811_v12  ;;  %v2178_v11 = vrot.slane %v3437_v21, %v4811_v12  ;;  %v2497_v21 = vld [vmem:[%s4820_s7 + $0xc] sm:$0x2] }
 0x272   : > { %2040 = vst [vmem:[%s4820_s7] sm:$0x8] %v2039_v48  ;;  %v2042_v40 = vsel %vm5041_vm6, %v2017_v35, %v2041_v9  ;;  %v2044_v56 = vld [vmem:[%s4820_s7 + $0x10] sm:$0x8]  ;;  %v2191_v4 = vsel %vm4816_vm4, %v2164_v2, %v2190_v8  ;;  %v2301_v32 = vrot.slane %v2287_v43, %v4807_v10  ;;  %v2303_v30 = vunpack.i.h.s16 %v2294_v41  ;;  %v2047_v39 = vld [vmem:[%s4820_s7 + $0x18] sm:$0x8] }
 0x273   : > { %2043 = vst [vmem:[%s4820_s7 + $0x8] sm:$0x8] %v2042_v40  ;;  %v2045_v19 = vsel %vm5041_vm6, %v2024_v14, %v2044_v56  ;;  %v2185_v27 = vrot.slane %v2157_v29, %v4811_v12  ;;  %2192 = vst [vmem:[%s4820_s7 + $0x4] sm:$0x1] %v2191_v4  ;;  %v2194_v63 = vsel %vm4816_vm4, %v2171_v46, %v2193_v13  ;;  %v2455_v49 = vunpack.i.h.s16 %v2446_v52  ;;  %v2500_v2 = vld [vmem:[%s4820_s7 + $0x14] sm:$0x2] }
 0x274   : > { %v2197_v25 = vsel %vm4816_vm4, %v2178_v11, %v2196_v22  ;;  %2046 = vst [vmem:[%s4820_s7 + $0x10] sm:$0x8] %v2045_v19  ;;  %v2048_v57 = vsel %vm5041_vm6, %v2031_v17, %v2047_v39  ;;  %2195 = vst [vmem:[%s4820_s7 + $0xc] sm:$0x1] %v2194_v63  ;;  %v2305_v42 = vunpack.i.h.s16 %v2301_v32  ;;  %v3441_v37 = vpack.i.b16 %v2294_v41, %v2294_v41  ;;  %v5090_v58 = vpop.f32.mrf.mxu1  ;;  %v5092_v38 = vpop.f32.mrf.mxu0 }
 0x275   : > { %2198 = vst [vmem:[%s4820_s7 + $0x14] sm:$0x1] %v2197_v25  ;;  %v2307_v3 = vpack.i.b16 %v2303_v30, %v2303_v30  ;;  %2049 = vst [vmem:[%s4820_s7 + $0x18] sm:$0x8] %v2048_v57  ;;  %v2200_v5 = vsel %vm4816_vm4, %v2185_v27, %v2199_v18  ;;  %v3442_v31 = vpack.i.b16 %v2301_v32, %v2301_v32 }
 0x276   : > { %v2453_v26 = vrot.slane %v2439_v44, %v4807_v10  ;;  %2201 = vst [vmem:[%s4820_s7 + $0x1c] sm:$0x1] %v2200_v5  ;;  %v2309_v35 = vpack.i.b16 %v2305_v42, %v2305_v42  ;;  %v2316_v14 = vrot.slane %v3441_v37, %v4811_v12  ;;  %v3446_v54 = vpack.i.b16 %v2446_v52, %v2446_v52  ;;  %v3704_v1 = vpop.f32.mrf.mxu1  ;;  %v3711_v15 = vpop.f32.mrf.mxu0 }
 0x277   : > { %v2323_v33 = vrot.slane %v2307_v3, %v4811_v12  ;;  %v2330_v24 = vrot.slane %v3442_v31, %v4811_v12  ;;  %v2459_v0 = vpack.i.b16 %v2455_v49, %v2455_v49  ;;  %v2590_v8 = vrot.slane %v2582_v51, %v4807_v10  ;;  %v2503_v51 = vld [vmem:[%s4820_s7 + $0x1c] sm:$0x2]  ;;  %v2801_v1 = vld [vmem:[%s4820_s7 + $0xc] sm:$0x4]  ;;  %v2807_v15 = vld [vmem:[%s4820_s7 + $0x1c] sm:$0x4] }
 0x278   : > { %v2457_v17 = vunpack.i.h.s16 %v2453_v26  ;;  %v3447_v59 = vpack.i.b16 %v2453_v26, %v2453_v26  ;;  %v2337_v55 = vrot.slane %v2309_v35, %v4811_v12  ;;  %v2468_v6 = vrot.slane %v3446_v54, %v4811_v12  ;;  %v2798_v35 = vld [vmem:[%s4820_s7 + $0x4] sm:$0x4] }
 0x279   : > { %v2742_v45 = vrot.slane %v2734_v34, %v4807_v10  ;;  %v2475_v16 = vrot.slane %v2459_v0, %v4811_v12  ;;  %v2886_v22 = vpack.c.bf16 %v5090_v58, %v5090_v58  ;;  %v2591_v41 = vcombine.high %v2590_v8, %v2590_v8 }
 0x27a   : > { %v2461_v28 = vpack.i.b16 %v2457_v17, %v2457_v17  ;;  %v2482_v13 = vrot.slane %v3447_v59, %v4811_v12  ;;  %v2342_v43 = vld [vmem:[%s4820_s7 + $0x4] sm:$0x1]  ;;  %v2495_v53 = vsel %vm4857_vm11, %v2468_v6, %v2494_v61  ;;  %v2598_v60 = vrot.slane %v2590_v8, %v4807_v10 }
 0x27b   : > { %v2743_v34 = vcombine.high %v2742_v45, %v2742_v45  ;;  %v2343_v44 = vsel %vm4850_vm9, %v2316_v14, %v2342_v43  ;;  %v2345_v52 = vld [vmem:[%s4820_s7 + $0xc] sm:$0x1]  ;;  %2496 = vst [vmem:[%s4820_s7 + $0x4] sm:$0x2] %v2495_v53  ;;  %v2498_v29 = vsel %vm4857_vm11, %v2475_v16, %v2497_v21  ;;  %v2605_v56 = vrot.slane %v2591_v41, %v4807_v10 }
 0x27c   : > { %v2348_v48 = vld [vmem:[%s4820_s7 + $0x14] sm:$0x1]  ;;  %v2489_v9 = vrot.slane %v2461_v28, %v4811_v12  ;;  %v2501_v46 = vsel %vm4857_vm11, %v2482_v13, %v2500_v2  ;;  %2344 = vst [vmem:[%s4820_s7 + $0x4] sm:$0x1] %v2343_v44  ;;  %v2346_v11 = vsel %vm4850_vm9, %v2323_v33, %v2345_v52  ;;  %2499 = vst [vmem:[%s4820_s7 + $0xc] sm:$0x2] %v2498_v29  ;;  %v2607_v4 = vunpack.i.h.s16 %v2598_v60  ;;  %v3186_v27 = vpop.f32.mrf.mxu1 }
 0x27d   : > { %v2349_v40 = vsel %vm4850_vm9, %v2330_v24, %v2348_v48  ;;  %2502 = vst [vmem:[%s4820_s7 + $0x14] sm:$0x2] %v2501_v46  ;;  %2347 = vst [vmem:[%s4820_s7 + $0xc] sm:$0x1] %v2346_v11  ;;  %v2351_v18 = vld [vmem:[%s4820_s7 + $0x1c] sm:$0x1]  ;;  %v3451_v30 = vpack.i.b16 %v2598_v60, %v2598_v60  ;;  %v2750_v19 = vrot.slane %v2742_v45, %v4807_v10  ;;  %v2609_v25 = vunpack.i.h.s16 %v2605_v56 }
 0x27e   : > { %2350 = vst [vmem:[%s4820_s7 + $0x14] sm:$0x1] %v2349_v40  ;;  %v2504_v32 = vsel %vm4857_vm11, %v2489_v9, %v2503_v51  ;;  %v2757_v39 = vrot.slane %v2743_v34, %v4807_v10  ;;  %v2352_v63 = vsel %vm4850_vm9, %v2337_v55, %v2351_v18  ;;  %v2611_v57 = vpack.i.b16 %v2607_v4, %v2607_v4  ;;  %v3718_v31 = vpop.f32.mrf.mxu1  ;;  %v2804_v24 = vld [vmem:[%s4820_s7 + $0x14] sm:$0x4] }
 0x27f   : > { %2505 = vst [vmem:[%s4820_s7 + $0x1c] sm:$0x2] %v2504_v32  ;;  %v3452_v42 = vpack.i.b16 %v2605_v56, %v2605_v56  ;;  %2353 = vst [vmem:[%s4820_s7 + $0x1c] sm:$0x1] %v2352_v63  ;;  %v2620_v37 = vrot.slane %v3451_v30, %v4811_v12  ;;  %v2759_v20 = vunpack.i.h.s16 %v2750_v19  ;;  %v3456_v5 = vpack.i.b16 %v2750_v19, %v2750_v19 }
 0x280   : > { %v2761_v3 = vunpack.i.h.s16 %v2757_v39  ;;  %v2613_v26 = vpack.i.b16 %v2609_v25, %v2609_v25  ;;  %v2627_v47 = vrot.slane %v2611_v57, %v4811_v12  ;;  %v3457_v58 = vpack.i.b16 %v2757_v39, %v2757_v39 }
 0x281   : > { %v2634_v49 = vrot.slane %v3452_v42, %v4811_v12  ;;  %v2763_v14 = vpack.i.b16 %v2759_v20, %v2759_v20  ;;  %v2772_v54 = vrot.slane %v3456_v5, %v4811_v12  ;;  %v2894_v17 = vrot.slane %v2886_v22, %v4807_v10 }
 0x282   : > { %v2765_v33 = vpack.i.b16 %v2761_v3, %v2761_v3  ;;  %v2641_v0 = vrot.slane %v2613_v26, %v4811_v12  ;;  %v2646_v59 = vld [vmem:[%s4820_s7 + $0x4] sm:$0x2]  ;;  %v2786_v61 = vrot.slane %v3457_v58, %v4811_v12  ;;  %v3038_v55 = vpack.c.bf16 %v5092_v38, %v5092_v38  ;;  %v3102_v3 = vld [vmem:[%s4820_s7 + $0x4] sm:$0x8] }
 0x283   : > { %v3190_v6 = vpack.c.bf16 %v3186_v27, %v3186_v27  ;;  %v2647_v21 = vsel %vm4911_vm14, %v2620_v37, %v2646_v59  ;;  %v2649_v2 = vld [vmem:[%s4820_s7 + $0xc] sm:$0x2]  ;;  %v2779_v45 = vrot.slane %v2763_v14, %v4811_v12  ;;  %v2799_v16 = vsel %vm4920_vm15, %v2772_v54, %v2798_v35 }
 0x284   : > { %v2652_v8 = vld [vmem:[%s4820_s7 + $0x14] sm:$0x2]  ;;  %v2793_v28 = vrot.slane %v2765_v33, %v4811_v12  ;;  %2648 = vst [vmem:[%s4820_s7 + $0x4] sm:$0x2] %v2647_v21  ;;  %v2650_v38 = vsel %vm4911_vm14, %v2627_v47, %v2649_v2  ;;  %2800 = vst [vmem:[%s4820_s7 + $0x4] sm:$0x4] %v2799_v16  ;;  %v2805_v22 = vsel %vm4920_vm15, %v2786_v61, %v2804_v24 }
 0x285   : > { %v2653_v13 = vsel %vm4911_vm14, %v2634_v49, %v2652_v8  ;;  %v2895_v43 = vcombine.high %v2894_v17, %v2894_v17  ;;  %2651 = vst [vmem:[%s4820_s7 + $0xc] sm:$0x2] %v2650_v38  ;;  %v2802_v51 = vsel %vm4920_vm15, %v2779_v45, %v2801_v1  ;;  %2806 = vst [vmem:[%s4820_s7 + $0x14] sm:$0x4] %v2805_v22  ;;  %v3105_v49 = vld [vmem:[%s4820_s7 + $0xc] sm:$0x8] }
 0x286   : > { %2654 = vst [vmem:[%s4820_s7 + $0x14] sm:$0x2] %v2653_v13  ;;  %v2655_v53 = vld [vmem:[%s4820_s7 + $0x1c] sm:$0x2]  ;;  %v2808_v41 = vsel %vm4920_vm15, %v2793_v28, %v2807_v15  ;;  %v2902_v60 = vrot.slane %v2894_v17, %v4807_v10  ;;  %v3046_v34 = vrot.slane %v3038_v55, %v4807_v10  ;;  %2803 = vst [vmem:[%s4820_s7 + $0xc] sm:$0x4] %v2802_v51 }
 0x287   : > { %v2656_v44 = vsel %vm4911_vm14, %v2641_v0, %v2655_v53  ;;  %2809 = vst [vmem:[%s4820_s7 + $0x1c] sm:$0x4] %v2808_v41  ;;  %v2909_v52 = vrot.slane %v2895_v43, %v4807_v10  ;;  %v3198_v48 = vrot.slane %v3190_v6, %v4807_v10  ;;  %v3111_v1 = vld [vmem:[%s4820_s7 + $0x1c] sm:$0x8] }
 0x288   : > { %2657 = vst [vmem:[%s4820_s7 + $0x1c] sm:$0x2] %v2656_v44  ;;  %v2911_v9 = vunpack.i.h.s16 %v2902_v60  ;;  %v3461_v29 = vpack.i.b16 %v2902_v60, %v2902_v60  ;;  %v3047_v46 = vcombine.high %v3046_v34, %v3046_v34  ;;  %v3054_v7 = vrot.slane %v3046_v34, %v4807_v10 }
 0x289   : > { %v2913_v11 = vunpack.i.h.s16 %v2909_v52  ;;  %v3462_v40 = vpack.i.b16 %v2909_v52, %v2909_v52  ;;  %v3199_v56 = vcombine.high %v3198_v48, %v3198_v48  ;;  %v3206_v23 = vrot.slane %v3198_v48, %v4807_v10 }
 0x28a   : > { %v2915_v4 = vpack.i.b16 %v2911_v9, %v2911_v9  ;;  %v2924_v18 = vrot.slane %v3461_v29, %v4811_v12  ;;  %v3061_v32 = vrot.slane %v3047_v46, %v4807_v10  ;;  %v3063_v30 = vunpack.i.h.s16 %v3054_v7 }
 0x28b   : > { %v2917_v19 = vpack.i.b16 %v2913_v11, %v2913_v11  ;;  %v2938_v39 = vrot.slane %v3462_v40, %v4811_v12  ;;  %v3466_v27 = vpack.i.b16 %v3054_v7, %v3054_v7  ;;  %v3213_v63 = vrot.slane %v3199_v56, %v4807_v10  ;;  %v2950_v57 = vld [vmem:[%s4820_s7 + $0x4] sm:$0x4]  ;;  %v3108_v10 = vld [vmem:[%s4820_s7 + $0x14] sm:$0x8] }
 0x28c   : > { %v2931_v25 = vrot.slane %v2915_v4, %v4811_v12  ;;  %v3065_v42 = vunpack.i.h.s16 %v3061_v32  ;;  %v3067_v37 = vpack.i.b16 %v3063_v30, %v3063_v30  ;;  %v3467_v20 = vpack.i.b16 %v3061_v32, %v3061_v32  ;;  %v2956_v26 = vld [vmem:[%s4820_s7 + $0x14] sm:$0x4] }
 0x28d   : > { %v2945_v5 = vrot.slane %v2917_v19, %v4811_v12  ;;  %v2951_v31 = vsel %vm4970_vm2, %v2924_v18, %v2950_v57  ;;  %v3076_v47 = vrot.slane %v3466_v27, %v4811_v12  ;;  %v3215_v58 = vunpack.i.h.s16 %v3206_v23  ;;  %v2953_v35 = vld [vmem:[%s4820_s7 + $0xc] sm:$0x4] }
 0x28e   : > { %2952 = vst [vmem:[%s4820_s7 + $0x4] sm:$0x4] %v2951_v31  ;;  %v2957_v14 = vsel %vm4970_vm2, %v2938_v39, %v2956_v26  ;;  %v2959_v33 = vld [vmem:[%s4820_s7 + $0x1c] sm:$0x4]  ;;  %v3069_v54 = vpack.i.b16 %v3065_v42, %v3065_v42  ;;  %v3083_v24 = vrot.slane %v3067_v37, %v4811_v12  ;;  %v3090_v17 = vrot.slane %v3467_v20, %v4811_v12 }
 0x28f   : > { %v2954_v0 = vsel %vm4970_vm2, %v2931_v25, %v2953_v35  ;;  %2958 = vst [vmem:[%s4820_s7 + $0x14] sm:$0x4] %v2957_v14  ;;  %v2960_v59 = vsel %vm4970_vm2, %v2945_v5, %v2959_v33  ;;  %v3103_v61 = vsel %vm4988_vm3, %v3076_v47, %v3102_v3  ;;  %v3217_v15 = vunpack.i.h.s16 %v3213_v63 }
 0x290   : > { %2955 = vst [vmem:[%s4820_s7 + $0xc] sm:$0x4] %v2954_v0  ;;  %2961 = vst [vmem:[%s4820_s7 + $0x1c] sm:$0x4] %v2960_v59  ;;  %v3097_v55 = vrot.slane %v3069_v54, %v4811_v12  ;;  %v3106_v6 = vsel %vm4988_vm3, %v3083_v24, %v3105_v49  ;;  %v3109_v50 = vsel %vm4988_vm3, %v3090_v17, %v3108_v10 }
 0x291   : > { %3104 = vst [vmem:[%s4820_s7 + $0x4] sm:$0x8] %v3103_v61  ;;  %v3471_v21 = vpack.i.b16 %v3206_v23, %v3206_v23  ;;  %3107 = vst [vmem:[%s4820_s7 + $0xc] sm:$0x8] %v3106_v6  ;;  %v3219_v2 = vpack.i.b16 %v3215_v58, %v3215_v58  ;;  %v3472_v8 = vpack.i.b16 %v3213_v63, %v3213_v63 }
 0x292   : > { %3110 = vst [vmem:[%s4820_s7 + $0x14] sm:$0x8] %v3109_v50  ;;  %v3112_v45 = vsel %vm4988_vm3, %v3097_v55, %v3111_v1  ;;  %v3221_v28 = vpack.i.b16 %v3217_v15, %v3217_v15 }
 0x293   : > { %3113 = vst [vmem:[%s4820_s7 + $0x1c] sm:$0x8] %v3112_v45  ;;  %v3228_v16 = vrot.slane %v3471_v21, %v4811_v12  ;;  %v3235_v38 = vrot.slane %v3219_v2, %v4811_v12  ;;  %v3242_v13 = vrot.slane %v3472_v8, %v4811_v12 }
 0x294   : > { %v3249_v22 = vrot.slane %v3221_v28, %v4811_v12 }
 0x298   : > { %v3254_v43 = vld [vmem:[%s4820_s7 + $0x4] sm:$0x8]  ;;  %v3257_v53 = vld [vmem:[%s4820_s7 + $0xc] sm:$0x8] }
 0x299   : > { %v3255_v36 = vsel %vm5041_vm6, %v3228_v16, %v3254_v43  ;;  %v3260_v51 = vld [vmem:[%s4820_s7 + $0x14] sm:$0x8]  ;;  %v3258_v41 = vsel %vm5041_vm6, %v3235_v38, %v3257_v53 }
 0x29a   : > { %3256 = vst [vmem:[%s4820_s7 + $0x4] sm:$0x8] %v3255_v36  ;;  %v3261_v60 = vsel %vm5041_vm6, %v3242_v13, %v3260_v51  ;;  %3259 = vst [vmem:[%s4820_s7 + $0xc] sm:$0x8] %v3258_v41  ;;  %v3263_v12 = vld [vmem:[%s4820_s7 + $0x1c] sm:$0x8] }
 0x29b   : > { %3262 = vst [vmem:[%s4820_s7 + $0x14] sm:$0x8] %v3261_v60  ;;  %v3264_v34 = vsel %vm5041_vm6, %v3249_v22, %v3263_v12 }
 0x29c   : > { %3265 = vst [vmem:[%s4820_s7 + $0x1c] sm:$0x8] %v3264_v34 }
 0x29d   : > { %3931 = shalt.err (!%p3928_p12)
}
 0x29e   : > { %s3932_s30 = scalar_lea.hbm %s5259_s5, 512  ;;  %s3936_s24 = scalar_lea.hbm %s5319_s4, 1024 }
 0x29f   : > { %p3933_p2 = scmp.ne.s32.totalorder %s5259_s5, %s3932_s30  ;;  %p3937_p11 = scmp.lt.s32.totalorder %s5259_s5, %s5319_s4 }
 0x2a0   : > { %p3938_p5 = scmp.lt.s32.totalorder %s3936_s24, %s3932_s30 }
 0x2a1   : > { %p3934_p6 = pnand %p3933_p2, %p5351_p7 }
 0x2a2   : > { %p3939_p1 = por %p3938_p5, %p3937_p11 }
 0x2a3   : > { %p3935_p10 = pneg %p3934_p6 }
 0x2a5   : > { %p3940_p3 = pnand %p3939_p1, %p3935_p10 }
 0x2a7   : > { %3943 = shalt.err (!%p3940_p3)
}
 0x2a8   : > { %s4013_s6 = smov 64   ;;  %s4014_s7 = smov 4  }
 0x2a9   : > { %3725 = dma.vmem_to_hbm [thread:$0]  (%p5351_p7), %s5261_s12, 512, %s5259_s5, %s3267_s9, %s4013_s6, %s4013_s6, %s4014_s7  }
 0x2aa PF: > { %s5352_s11 = sld [smem:[#allocation11_spill]]  ;;  %s3297_s18 = sand.u32 1, %s3982_s15  }
 0x2ab   : > { %p5353_p13 = scmp.ne.s32.totalorder %s5329_s28, 0  ;;  %s3298_s13 = scalar_lea.sflag [#allocation4], %s3297_s18 }
 0x2b0   : > { %p5354_p4 = scmp.ge.s32.totalorder %s5352_s11, 2 }
 0x2b2   : > { %p3736_p0 = pnand %p5354_p4, %p5353_p13 }
 0x2b4   : > { %p3737_p9 = pneg %p3736_p0 }
 0x2b6   : > { %3977 = dma.done.wait (%p3737_p9), %s3298_s13, 512  }
 0x2b7   : > { %3979 = vsyncadd (%p3737_p9), %s3298_s13, 4294966784  ;;  %s21_s20 = sadd.s32 1, %s5352_s11   ;;  %s5355_s15 = smov %s3986_s16 }
 0x2b8   : > { %p18_p8 = scmp.ge.s32.totalorder %s21_s20, 4   ;;  %s5356_s16 = smov %s3990_s17 }
 0x2b9   : > { %s5357_s17 = smov %s4148_s14  ;;  %s5358_s18 = smov %s3998_s19 }
 0x2ba   : > { %s5359_s19 = smov %s5361_s8  ;;  %20 = sbr.rel (!%p18_p8) target bundleno = 9 (0x9), region = 85 }
 0x2bf   :  { %3303 = vsyncpa [#allocation3], 1 }
 0x2c0   :  { %3305 = vsyncpa [#allocation3 + $0x1], 1 }
 0x2c1   :  { %3306 = vsyncpa [#allocation6], 1 }
 0x2c2   :  { %3307 = vsyncpa [#allocation4], 1 }
 0x2c3   :  { %3309 = vsyncpa [#allocation4 + $0x1], 1 }

</bundles_post_ra>
